<compile_context>
chip_gen: v7x
topology: tpu7x:2x2x1
jax: 0.10.0
libtpu: 0.0.40
codegen_flags: <defaults>
</compile_context>

<pallas_src>
import functools

import jax
import jax.numpy as jnp
from jax import lax
from jax.experimental import pallas as pl
from jax.experimental.pallas import tpu as pltpu


PADL = 8  # sublane-aligned left padding of the depthwise scratch


# ----------------------------------------------------------------------------- kernel
def _inverted_residual_kernel(x_ref, w1_ref, b1_ref, wd_ref, b2_ref,
                              w3_ref, b3_ref, o_ref, pad_ref, acc_ref,
                              *, H, W, stride, use_res, compute_dtype):
    """Grid = (image n, mid-channel tile m).

    x_ref  : (1, Cin, H*W)        input image, channel-major, spatial on lanes
    w1_ref : (1, Cin, mid_blk)    folded 1x1 expand conv + BN (slice of mid)
    b1_ref : (1, 1, mid_blk)
    wd_ref : (1, 9, mid_blk)      folded 3x3 depthwise conv + BN, row = kh*3+kw
    b2_ref : (1, 1, mid_blk)
    w3_ref : (1, oup, mid_blk)    folded 1x1 project conv + BN (slice of mid)
    b3_ref : (oup, 1)
    o_ref  : (1, oup, Ho*Wo)      output image, channel-major
    pad_ref: VMEM (H+2, PADL+W+1, mid_blk)  zero-bordered expanded activation
    acc_ref: VMEM (oup, Ho*Wo) f32          projection accumulator over m
    """
    m = pl.program_id(1)
    mid_blk = w1_ref.shape[2]
    Ho = (H - 1) // stride + 1
    Wo = (W - 1) // stride + 1
    padw = PADL + W + 1

    # -- once per image: zero the projection accumulator and only the 1-pixel
    # border of the depthwise scratch (interior fully rewritten every step). --
    @pl.when(m == 0)
    def _init():
        acc_ref[...] = jnp.zeros_like(acc_ref)
        zrow = jnp.zeros((1, padw, mid_blk), jnp.float32)
        pad_ref[0:1, :, :] = zrow
        pad_ref[H + 1:H + 2, :, :] = zrow
        zcol = jnp.zeros((H + 2, 1, mid_blk), jnp.float32)
        pad_ref[:, PADL - 1:PADL, :] = zcol
        pad_ref[:, PADL + W:PADL + W + 1, :] = zcol

    x = x_ref[0]                                            # (Cin, H*W)

    # -- 1x1 expand conv (+BN) + ReLU6: contract Cin on the MXU.
    #    einsum('cs,cm->sm'): f32 accumulation, optional bf16 inputs. --
    h = lax.dot_general(x.astype(compute_dtype),
                        w1_ref[0].astype(compute_dtype),
                        (((0,), (0,)), ((), ())),
                        preferred_element_type=jnp.float32)  # (H*W, mid_blk)
    h = jnp.clip(h + b1_ref[0], 0.0, 6.0)

    # -- sublane-aligned interior store of the expanded activation --
    pad_ref[1:H + 1, PADL:PADL + W, :] = h.reshape(H, W, mid_blk)

    # -- 3x3 depthwise conv (+BN) + ReLU6, computed at stride 1 (f32 VPU) --
    dw = jnp.broadcast_to(b2_ref[0], (H, W, mid_blk)).astype(jnp.float32)
    for kh in range(3):
        for kw in range(3):
            win = pad_ref[kh:kh + H, PADL - 1 + kw:PADL - 1 + kw + W, :]
            tap = wd_ref[0, kh * 3 + kw:kh * 3 + kw + 1, :]  # (1, mid_blk)
            dw = dw + win * tap
    dw = jnp.clip(dw, 0.0, 6.0)

    if stride == 1:
        act = dw.reshape(H * W, mid_blk)
    else:
        # Subsample once with a single strided read instead of 9 strided taps.
        pad_ref[1:H + 1, PADL:PADL + W, :] = dw
        act = pad_ref[pl.ds(1, Ho, stride=stride),
                      pl.ds(PADL, Wo, stride=stride), :]
        act = act.reshape(Ho * Wo, mid_blk)

    # -- 1x1 project conv (+BN): contract mid_blk, accumulate across m tiles --
    acc_ref[...] += lax.dot_general(
        w3_ref[0].astype(compute_dtype), act.astype(compute_dtype),
        (((1,), (1,)), ((), ())),
        preferred_element_type=jnp.float32)                  # (oup, Ho*Wo)

    # -- last mid tile: add bias (+ residual) and write the lane-dense output --
    @pl.when(m == pl.num_programs(1) - 1)
    def _finalize():
        out = acc_ref[...] + b3_ref[...]
        if use_res:                      # stride == 1 and Cin == oup
            out = out + x.astype(jnp.float32)
        o_ref[0] = out.astype(o_ref.dtype)


# ------------------------------------------------------------------------- pallas call
def pruned_inverted_residual(x_nchw, params, *, stride, mid_block=None,
                             compute_dtype=jnp.float32, vmem_limit_bytes=None):
    """Forward pass matching PrunedInvertedResidual (eval mode, BN folded).

    NCHW in / NCHW out; only free row-major reshapes around the kernel.
    """
    N, Cin, H, W = x_nchw.shape
    w1, b1, wd, b2, w3, b3 = (params[k] for k in ("w1", "b1", "wd", "b2",
                                                  "w3", "b3"))
    mid = w1.shape[1]
    oup = w3.shape[0]
    use_res = (stride == 1) and (Cin == oup)
    Ho = (H - 1) // stride + 1
    Wo = (W - 1) // stride + 1

    mid_block = mid if mid_block is None else mid_block
    assert mid % mid_block == 0, "mid_block must divide mid"
    M = mid // mid_block

    # Free (layout-preserving) reshape only; no activation transposes in HBM.
    x_flat = x_nchw.reshape(N, Cin, H * W)

    # Tiny one-time host-side weight re-tiling: (.., mid) -> (M, .., mid_block)
    # so every weight block keeps its full (sublane, lane) extent.
    def tile_mid(a):
        lead = a.shape[:-1]
        return jnp.moveaxis(a.reshape(lead + (M, mid_block)), -2, 0)

    w1_t = tile_mid(w1)                  # (M, Cin, mid_block)
    b1_t = tile_mid(b1)                  # (M, 1,   mid_block)
    wd_t = tile_mid(wd)                  # (M, 9,   mid_block)
    b2_t = tile_mid(b2)                  # (M, 1,   mid_block)
    w3_t = tile_mid(w3)                  # (M, oup, mid_block)

    kernel = functools.partial(_inverted_residual_kernel, H=H, W=W,
                               stride=stride, use_res=use_res,
                               compute_dtype=compute_dtype)

    out_flat = pl.pallas_call(
        kernel,
        out_shape=jax.ShapeDtypeStruct((N, oup, Ho * Wo), x_nchw.dtype),
        grid_spec=pltpu.PrefetchScalarGridSpec(
            num_scalar_prefetch=0,
            grid=(N, M),
            in_specs=[
                pl.BlockSpec((1, Cin, H * W), lambda n, m: (n, 0, 0)),
                pl.BlockSpec((1, Cin, mid_block), lambda n, m: (m, 0, 0)),
                pl.BlockSpec((1, 1, mid_block), lambda n, m: (m, 0, 0)),
                pl.BlockSpec((1, 9, mid_block), lambda n, m: (m, 0, 0)),
                pl.BlockSpec((1, 1, mid_block), lambda n, m: (m, 0, 0)),
                pl.BlockSpec((1, oup, mid_block), lambda n, m: (m, 0, 0)),
                pl.BlockSpec((oup, 1), lambda n, m: (0, 0)),
            ],
            out_specs=pl.BlockSpec((1, oup, Ho * Wo), lambda n, m: (n, 0, 0)),
            scratch_shapes=[
                pltpu.VMEM((H + 2, PADL + W + 1, mid_block), jnp.float32),
                pltpu.VMEM((oup, Ho * Wo), jnp.float32),
            ],
        ),
        compiler_params=pltpu.CompilerParams(
            dimension_semantics=("parallel", "arbitrary"),
            vmem_limit_bytes=vmem_limit_bytes),
    )(x_flat, w1_t, b1_t, wd_t, b2_t, w3_t, b3)

    return out_flat.reshape(N, oup, Ho, Wo)


# ------------------------------------------------------------------ params (deterministic)
def _bn_fold(gamma, beta, mean, var, eps=1e-5):
    scale = gamma / jnp.sqrt(var + eps)
    bias = beta - mean * scale
    return scale, bias


def init_params(key, inp, mid, oup):
    ks = jax.random.split(key, 15)
    f32 = jnp.float32

    # raw PyTorch-shaped parameters
    w1_raw = 0.1 * jax.random.normal(ks[0], (mid, inp, 1, 1), f32)
    wd_raw = 0.1 * jax.random.normal(ks[1], (mid, 1, 3, 3), f32)
    w3_raw = 0.1 * jax.random.normal(ks[2], (oup, mid, 1, 1), f32)

    def bn(kg, kb, km, kv, c):
        gamma = 1.0 + 0.1 * jax.random.normal(kg, (c,), f32)
        beta = 0.1 * jax.random.normal(kb, (c,), f32)
        mean = 0.1 * jax.random.normal(km, (c,), f32)
        var = 0.5 + 0.2 * jnp.abs(jax.random.normal(kv, (c,), f32))
        return gamma, beta, mean, var

    s1, b1 = _bn_fold(*bn(ks[3], ks[4], ks[5], ks[6], mid))
    s2, b2 = _bn_fold(*bn(ks[7], ks[8], ks[9], ks[10], mid))
    s3, b3 = _bn_fold(*bn(ks[11], ks[12], ks[13], ks[14], oup))

    # fold BN scales into the conv weights, packed for the kernel
    w1 = (w1_raw[:, :, 0, 0] * s1[:, None]).T                    # (inp, mid)
    wd = (wd_raw[:, 0] * s2[:, None, None]).reshape(mid, 9).T    # (9, mid)
    w3 = w3_raw[:, :, 0, 0] * s3[:, None]                        # (oup, mid)

    return {"w1": w1, "b1": b1.reshape(1, mid), "wd": wd,
            "b2": b2.reshape(1, mid), "w3": w3, "b3": b3.reshape(oup, 1)}


# ------------------------------------------------------------------ pure-JAX reference
def ref_forward_nchw(x, p, *, stride):
    N, Cin, H, W = x.shape
    mid = p["w1"].shape[1]
    oup = p["w3"].shape[0]
    dn = ("NCHW", "OIHW", "NCHW")
    hi = lax.Precision.HIGHEST
    w1 = jnp.transpose(p["w1"]).reshape(mid, Cin, 1, 1)
    wd = jnp.transpose(p["wd"]).reshape(mid, 1, 3, 3)
    w3 = p["w3"].reshape(oup, mid, 1, 1)

    h = lax.conv_general_dilated(x, w1, (1, 1), "VALID", dimension_numbers=dn,
                                 precision=hi) + p["b1"].reshape(1, mid, 1, 1)
    h = jnp.clip(h, 0.0, 6.0)
    hd = lax.conv_general_dilated(h, wd, (stride, stride), ((1, 1), (1, 1)),
                                  dimension_numbers=dn, feature_group_count=mid,
                                  precision=hi) + p["b2"].reshape(1, mid, 1, 1)
    hd = jnp.clip(hd, 0.0, 6.0)
    out = lax.conv_general_dilated(hd, w3, (1, 1), "VALID", dimension_numbers=dn,
                                   precision=hi) + p["b3"].reshape(1, oup, 1, 1)
    if stride == 1 and Cin == oup:
        out = out + x
    return out


# ----------------------------------------------------------------------------- main
if __name__ == "__main__":
    key = jax.random.PRNGKey(0)
    kx1, kp1, kx2, kp2 = jax.random.split(key, 4)

    # --- config 1: stride 1, inp == oup -> residual path; 2 mid tiles ---
    N, inp, mid, oup, H, W = 2, 4, 16, 4, 16, 16
    x1 = jax.random.normal(kx1, (N, inp, H, W), jnp.float32)
    p1 = init_params(kp1, inp, mid, oup)
    out1 = jax.block_until_ready(
        pruned_inverted_residual(x1, p1, stride=1, mid_block=8))
    assert out1.shape == (N, oup, H, W)
    ref1 = ref_forward_nchw(x1, p1, stride=1)
    err1 = float(jnp.max(jnp.abs(out1 - ref1)))
    # tolerance allows the MXU's default-precision f32 matmul passes
    assert err1 < 5e-3, f"stride-1 max abs error too large: {err1}"

    # --- config 2: stride 2, inp != oup -> no residual ---
    inp2, mid2, oup2 = 4, 16, 8
    x2 = jax.random.normal(kx2, (N, inp2, H, W), jnp.float32)
    p2 = init_params(kp2, inp2, mid2, oup2)
    out2 = jax.block_until_ready(
        pruned_inverted_residual(x2, p2, stride=2, mid_block=8))
    assert out2.shape == (N, oup2, H // 2, W // 2)
    ref2 = ref_forward_nchw(x2, p2, stride=2)
    err2 = float(jnp.max(jnp.abs(out2 - ref2)))
    assert err2 < 5e-3, f"stride-2 max abs error too large: {err2}"

    # --- config 1 with bf16 activations + bf16 MXU inputs (f32 accumulation) ---
    out3 = jax.block_until_ready(
        pruned_inverted_residual(x1.astype(jnp.bfloat16), p1, stride=1,
                                 mid_block=8, compute_dtype=jnp.bfloat16))
    err3 = float(jnp.max(jnp.abs(out3.astype(jnp.float32) - ref1)))
    assert err3 < 7.5e-2, f"bf16 max abs error too large: {err3}"

    print("KERNEL_OK")
</pallas_src>

<mosaic_0001>
module attributes {stable_mosaic.version = 11 : i64} {
  func.func @_inverted_residual_kernel(%arg0: i32, %arg1: i32, %arg2: memref<1x4x256xf32, #tpu.memory_space<vmem>>, %arg3: memref<1x4x8xf32, #tpu.memory_space<vmem>>, %arg4: memref<1x1x8xf32, #tpu.memory_space<vmem>>, %arg5: memref<1x9x8xf32, #tpu.memory_space<vmem>>, %arg6: memref<1x1x8xf32, #tpu.memory_space<vmem>>, %arg7: memref<1x4x8xf32, #tpu.memory_space<vmem>>, %arg8: memref<4x1xf32, #tpu.memory_space<vmem>>, %arg9: memref<1x4x256xf32, #tpu.memory_space<vmem>>, %arg10: memref<18x25x8xf32, #tpu.memory_space<vmem>>, %arg11: memref<4x256xf32, #tpu.memory_space<vmem>>) attributes {dimension_semantics = [#tpu.dimension_semantics<parallel>, #tpu.dimension_semantics<arbitrary>], iteration_bounds = array<i64: 2, 2>, scalar_prefetch = 0 : i64, scratch_operands = 2 : i64, tpu.core_type = #tpu.core_type<tc>, window_params = [{transform_indices = @transform_0, window_bounds = array<i64: 1, 4, 256>}, {transform_indices = @transform_1, window_bounds = array<i64: 1, 4, 8>}, {transform_indices = @transform_2, window_bounds = array<i64: 1, 1, 8>}, {transform_indices = @transform_3, window_bounds = array<i64: 1, 9, 8>}, {transform_indices = @transform_4, window_bounds = array<i64: 1, 1, 8>}, {transform_indices = @transform_5, window_bounds = array<i64: 1, 4, 8>}, {pipeline_mode = #tpu.pipeline_mode<synchronous>, transform_indices = @transform_6, window_bounds = array<i64: 4, 1>}, {transform_indices = @transform_7, window_bounds = array<i64: 1, 4, 256>}]} {
    %c0_i32 = arith.constant 0 : i32
    %0 = arith.cmpi eq, %arg1, %c0_i32 : i32
    %1 = arith.extui %0 : i1 to i32
    %c0_i32_0 = arith.constant 0 : i32
    %2 = arith.cmpi ne, %1, %c0_i32_0 : i32
    scf.if %2 {
      %cst_73 = arith.constant 0.000000e+00 : f32
      %99 = vector.broadcast %cst_73 : f32 to vector<4x256xf32>
      %c0_74 = arith.constant 0 : index
      %c0_75 = arith.constant 0 : index
      %100 = vector.load %arg11[%c0_74, %c0_75] : memref<4x256xf32, #tpu.memory_space<vmem>>, vector<4x256xf32>
      tpu.vector_store %arg11[%c0_74, %c0_75], %99 {strides = array<i32>} : memref<4x256xf32, #tpu.memory_space<vmem>>, vector<4x256xf32>,
      %cst_76 = arith.constant 0.000000e+00 : f32
      %101 = vector.broadcast %cst_76 : f32 to vector<1x25x8xf32>
      %c0_77 = arith.constant 0 : index
      %c0_78 = arith.constant 0 : index
      %c0_79 = arith.constant 0 : index
      %102 = vector.load %arg10[%c0_77, %c0_78, %c0_79] : memref<18x25x8xf32, #tpu.memory_space<vmem>>, vector<1x25x8xf32>
      tpu.vector_store %arg10[%c0_77, %c0_78, %c0_79], %101 {strides = array<i32>} : memref<18x25x8xf32, #tpu.memory_space<vmem>>, vector<1x25x8xf32>,
      %c17 = arith.constant 17 : index
      %c0_80 = arith.constant 0 : index
      %c0_81 = arith.constant 0 : index
      %103 = vector.load %arg10[%c17, %c0_80, %c0_81] : memref<18x25x8xf32, #tpu.memory_space<vmem>>, vector<1x25x8xf32>
      tpu.vector_store %arg10[%c17, %c0_80, %c0_81], %101 {strides = array<i32>} : memref<18x25x8xf32, #tpu.memory_space<vmem>>, vector<1x25x8xf32>,
      %cst_82 = arith.constant 0.000000e+00 : f32
      %104 = vector.broadcast %cst_82 : f32 to vector<18x1x8xf32>
      %c0_83 = arith.constant 0 : index
      %c7_84 = arith.constant 7 : index
      %c0_85 = arith.constant 0 : index
      %105 = vector.load %arg10[%c0_83, %c7_84, %c0_85] : memref<18x25x8xf32, #tpu.memory_space<vmem>>, vector<18x1x8xf32>
      tpu.vector_store %arg10[%c0_83, %c7_84, %c0_85], %104 {strides = array<i32>} : memref<18x25x8xf32, #tpu.memory_space<vmem>>, vector<18x1x8xf32>,
      %c0_86 = arith.constant 0 : index
      %c24 = arith.constant 24 : index
      %c0_87 = arith.constant 0 : index
      %106 = vector.load %arg10[%c0_86, %c24, %c0_87] : memref<18x25x8xf32, #tpu.memory_space<vmem>>, vector<18x1x8xf32>
      tpu.vector_store %arg10[%c0_86, %c24, %c0_87], %104 {strides = array<i32>} : memref<18x25x8xf32, #tpu.memory_space<vmem>>, vector<18x1x8xf32>,
    } else {
    }
    %c0 = arith.constant 0 : index
    %c0_1 = arith.constant 0 : index
    %c0_2 = arith.constant 0 : index
    %3 = vector.load %arg2[%c0, %c0_1, %c0_2] : memref<1x4x256xf32, #tpu.memory_space<vmem>>, vector<1x4x256xf32>
    %4 = vector.shape_cast %3 : vector<1x4x256xf32> to vector<4x256xf32>
    %c0_3 = arith.constant 0 : index
    %c0_4 = arith.constant 0 : index
    %c0_5 = arith.constant 0 : index
    %5 = vector.load %arg3[%c0_3, %c0_4, %c0_5] : memref<1x4x8xf32, #tpu.memory_space<vmem>>, vector<1x4x8xf32>
    %6 = vector.shape_cast %5 : vector<1x4x8xf32> to vector<4x8xf32>
    %cst = arith.constant dense<0.000000e+00> : vector<256x8xf32>
    %7 = tpu.matmul %4, %6, %cst {dimension_numbers = #tpu.dot_dimension_numbers<[0], [0], [1], [1], [0, 1, 1, 1], [], []>} : vector<4x256xf32>, vector<4x8xf32>, vector<256x8xf32> -> vector<256x8xf32>
    %c0_6 = arith.constant 0 : index
    %c0_7 = arith.constant 0 : index
    %c0_8 = arith.constant 0 : index
    %8 = vector.load %arg4[%c0_6, %c0_7, %c0_8] : memref<1x1x8xf32, #tpu.memory_space<vmem>>, vector<1x1x8xf32>
    %9 = vector.shape_cast %8 : vector<1x1x8xf32> to vector<1x8xf32>
    %10 = vector.broadcast %9 : vector<1x8xf32> to vector<256x8xf32>
    %11 = arith.addf %7, %10 : vector<256x8xf32>
    %cst_9 = arith.constant 0.000000e+00 : f32
    %cst_10 = arith.constant 6.000000e+00 : f32
    %12 = vector.broadcast %cst_9 : f32 to vector<256x8xf32>
    %13 = arith.maximumf %12, %11 : vector<256x8xf32>
    %14 = vector.broadcast %cst_10 : f32 to vector<256x8xf32>
    %15 = arith.minimumf %14, %13 : vector<256x8xf32>
    %16 = vector.shape_cast %15 : vector<256x8xf32> to vector<16x16x8xf32>
    %c1 = arith.constant 1 : index
    %c8 = arith.constant 8 : index
    %c0_11 = arith.constant 0 : index
    %17 = vector.load %arg10[%c1, %c8, %c0_11] : memref<18x25x8xf32, #tpu.memory_space<vmem>>, vector<16x16x8xf32>
    tpu.vector_store %arg10[%c1, %c8, %c0_11], %16 {strides = array<i32>} : memref<18x25x8xf32, #tpu.memory_space<vmem>>, vector<16x16x8xf32>,
    %c0_12 = arith.constant 0 : index
    %c0_13 = arith.constant 0 : index
    %c0_14 = arith.constant 0 : index
    %18 = vector.load %arg6[%c0_12, %c0_13, %c0_14] : memref<1x1x8xf32, #tpu.memory_space<vmem>>, vector<1x1x8xf32>
    %19 = vector.shape_cast %18 : vector<1x1x8xf32> to vector<1x8xf32>
    %20 = vector.shape_cast %19 : vector<1x8xf32> to vector<1x1x8xf32>
    %21 = vector.broadcast %20 : vector<1x1x8xf32> to vector<16x16x8xf32>
    %c0_15 = arith.constant 0 : index
    %c7 = arith.constant 7 : index
    %c0_16 = arith.constant 0 : index
    %22 = vector.load %arg10[%c0_15, %c7, %c0_16] : memref<18x25x8xf32, #tpu.memory_space<vmem>>, vector<16x16x8xf32>
    %c0_17 = arith.constant 0 : index
    %c0_18 = arith.constant 0 : index
    %c0_19 = arith.constant 0 : index
    %23 = vector.load %arg5[%c0_17, %c0_18, %c0_19] : memref<1x9x8xf32, #tpu.memory_space<vmem>>, vector<1x1x8xf32>
    %24 = vector.shape_cast %23 : vector<1x1x8xf32> to vector<1x8xf32>
    %25 = vector.shape_cast %24 : vector<1x8xf32> to vector<1x1x8xf32>
    %26 = vector.broadcast %25 : vector<1x1x8xf32> to vector<16x16x8xf32>
    %27 = arith.mulf %22, %26 : vector<16x16x8xf32>
    %28 = arith.addf %21, %27 : vector<16x16x8xf32>
    %c0_20 = arith.constant 0 : index
    %c8_21 = arith.constant 8 : index
    %c0_22 = arith.constant 0 : index
    %29 = vector.load %arg10[%c0_20, %c8_21, %c0_22] : memref<18x25x8xf32, #tpu.memory_space<vmem>>, vector<16x16x8xf32>
    %c0_23 = arith.constant 0 : index
    %c1_24 = arith.constant 1 : index
    %c0_25 = arith.constant 0 : index
    %30 = vector.load %arg5[%c0_23, %c1_24, %c0_25] : memref<1x9x8xf32, #tpu.memory_space<vmem>>, vector<1x1x8xf32>
    %31 = vector.shape_cast %30 : vector<1x1x8xf32> to vector<1x8xf32>
    %32 = vector.shape_cast %31 : vector<1x8xf32> to vector<1x1x8xf32>
    %33 = vector.broadcast %32 : vector<1x1x8xf32> to vector<16x16x8xf32>
    %34 = arith.mulf %29, %33 : vector<16x16x8xf32>
    %35 = arith.addf %28, %34 : vector<16x16x8xf32>
    %c0_26 = arith.constant 0 : index
    %c9 = arith.constant 9 : index
    %c0_27 = arith.constant 0 : index
    %36 = vector.load %arg10[%c0_26, %c9, %c0_27] : memref<18x25x8xf32, #tpu.memory_space<vmem>>, vector<16x16x8xf32>
    %c0_28 = arith.constant 0 : index
    %c2 = arith.constant 2 : index
    %c0_29 = arith.constant 0 : index
    %37 = vector.load %arg5[%c0_28, %c2, %c0_29] : memref<1x9x8xf32, #tpu.memory_space<vmem>>, vector<1x1x8xf32>
    %38 = vector.shape_cast %37 : vector<1x1x8xf32> to vector<1x8xf32>
    %39 = vector.shape_cast %38 : vector<1x8xf32> to vector<1x1x8xf32>
    %40 = vector.broadcast %39 : vector<1x1x8xf32> to vector<16x16x8xf32>
    %41 = arith.mulf %36, %40 : vector<16x16x8xf32>
    %42 = arith.addf %35, %41 : vector<16x16x8xf32>
    %c1_30 = arith.constant 1 : index
    %c7_31 = arith.constant 7 : index
    %c0_32 = arith.constant 0 : index
    %43 = vector.load %arg10[%c1_30, %c7_31, %c0_32] : memref<18x25x8xf32, #tpu.memory_space<vmem>>, vector<16x16x8xf32>
    %c0_33 = arith.constant 0 : index
    %c3 = arith.constant 3 : index
    %c0_34 = arith.constant 0 : index
    %44 = vector.load %arg5[%c0_33, %c3, %c0_34] : memref<1x9x8xf32, #tpu.memory_space<vmem>>, vector<1x1x8xf32>
    %45 = vector.shape_cast %44 : vector<1x1x8xf32> to vector<1x8xf32>
    %46 = vector.shape_cast %45 : vector<1x8xf32> to vector<1x1x8xf32>
    %47 = vector.broadcast %46 : vector<1x1x8xf32> to vector<16x16x8xf32>
    %48 = arith.mulf %43, %47 : vector<16x16x8xf32>
    %49 = arith.addf %42, %48 : vector<16x16x8xf32>
    %c1_35 = arith.constant 1 : index
    %c8_36 = arith.constant 8 : index
    %c0_37 = arith.constant 0 : index
    %50 = vector.load %arg10[%c1_35, %c8_36, %c0_37] : memref<18x25x8xf32, #tpu.memory_space<vmem>>, vector<16x16x8xf32>
    %c0_38 = arith.constant 0 : index
    %c4 = arith.constant 4 : index
    %c0_39 = arith.constant 0 : index
    %51 = vector.load %arg5[%c0_38, %c4, %c0_39] : memref<1x9x8xf32, #tpu.memory_space<vmem>>, vector<1x1x8xf32>
    %52 = vector.shape_cast %51 : vector<1x1x8xf32> to vector<1x8xf32>
    %53 = vector.shape_cast %52 : vector<1x8xf32> to vector<1x1x8xf32>
    %54 = vector.broadcast %53 : vector<1x1x8xf32> to vector<16x16x8xf32>
    %55 = arith.mulf %50, %54 : vector<16x16x8xf32>
    %56 = arith.addf %49, %55 : vector<16x16x8xf32>
    %c1_40 = arith.constant 1 : index
    %c9_41 = arith.constant 9 : index
    %c0_42 = arith.constant 0 : index
    %57 = vector.load %arg10[%c1_40, %c9_41, %c0_42] : memref<18x25x8xf32, #tpu.memory_space<vmem>>, vector<16x16x8xf32>
    %c0_43 = arith.constant 0 : index
    %c5 = arith.constant 5 : index
    %c0_44 = arith.constant 0 : index
    %58 = vector.load %arg5[%c0_43, %c5, %c0_44] : memref<1x9x8xf32, #tpu.memory_space<vmem>>, vector<1x1x8xf32>
    %59 = vector.shape_cast %58 : vector<1x1x8xf32> to vector<1x8xf32>
    %60 = vector.shape_cast %59 : vector<1x8xf32> to vector<1x1x8xf32>
    %61 = vector.broadcast %60 : vector<1x1x8xf32> to vector<16x16x8xf32>
    %62 = arith.mulf %57, %61 : vector<16x16x8xf32>
    %63 = arith.addf %56, %62 : vector<16x16x8xf32>
    %c2_45 = arith.constant 2 : index
    %c7_46 = arith.constant 7 : index
    %c0_47 = arith.constant 0 : index
    %64 = vector.load %arg10[%c2_45, %c7_46, %c0_47] : memref<18x25x8xf32, #tpu.memory_space<vmem>>, vector<16x16x8xf32>
    %c0_48 = arith.constant 0 : index
    %c6 = arith.constant 6 : index
    %c0_49 = arith.constant 0 : index
    %65 = vector.load %arg5[%c0_48, %c6, %c0_49] : memref<1x9x8xf32, #tpu.memory_space<vmem>>, vector<1x1x8xf32>
    %66 = vector.shape_cast %65 : vector<1x1x8xf32> to vector<1x8xf32>
    %67 = vector.shape_cast %66 : vector<1x8xf32> to vector<1x1x8xf32>
    %68 = vector.broadcast %67 : vector<1x1x8xf32> to vector<16x16x8xf32>
    %69 = arith.mulf %64, %68 : vector<16x16x8xf32>
    %70 = arith.addf %63, %69 : vector<16x16x8xf32>
    %c2_50 = arith.constant 2 : index
    %c8_51 = arith.constant 8 : index
    %c0_52 = arith.constant 0 : index
    %71 = vector.load %arg10[%c2_50, %c8_51, %c0_52] : memref<18x25x8xf32, #tpu.memory_space<vmem>>, vector<16x16x8xf32>
    %c0_53 = arith.constant 0 : index
    %c7_54 = arith.constant 7 : index
    %c0_55 = arith.constant 0 : index
    %72 = vector.load %arg5[%c0_53, %c7_54, %c0_55] : memref<1x9x8xf32, #tpu.memory_space<vmem>>, vector<1x1x8xf32>
    %73 = vector.shape_cast %72 : vector<1x1x8xf32> to vector<1x8xf32>
    %74 = vector.shape_cast %73 : vector<1x8xf32> to vector<1x1x8xf32>
    %75 = vector.broadcast %74 : vector<1x1x8xf32> to vector<16x16x8xf32>
    %76 = arith.mulf %71, %75 : vector<16x16x8xf32>
    %77 = arith.addf %70, %76 : vector<16x16x8xf32>
    %c2_56 = arith.constant 2 : index
    %c9_57 = arith.constant 9 : index
    %c0_58 = arith.constant 0 : index
    %78 = vector.load %arg10[%c2_56, %c9_57, %c0_58] : memref<18x25x8xf32, #tpu.memory_space<vmem>>, vector<16x16x8xf32>
    %c0_59 = arith.constant 0 : index
    %c8_60 = arith.constant 8 : index
    %c0_61 = arith.constant 0 : index
    %79 = vector.load %arg5[%c0_59, %c8_60, %c0_61] : memref<1x9x8xf32, #tpu.memory_space<vmem>>, vector<1x1x8xf32>
    %80 = vector.shape_cast %79 : vector<1x1x8xf32> to vector<1x8xf32>
    %81 = vector.shape_cast %80 : vector<1x8xf32> to vector<1x1x8xf32>
    %82 = vector.broadcast %81 : vector<1x1x8xf32> to vector<16x16x8xf32>
    %83 = arith.mulf %78, %82 : vector<16x16x8xf32>
    %84 = arith.addf %77, %83 : vector<16x16x8xf32>
    %cst_62 = arith.constant 0.000000e+00 : f32
    %cst_63 = arith.constant 6.000000e+00 : f32
    %85 = vector.broadcast %cst_62 : f32 to vector<16x16x8xf32>
    %86 = arith.maximumf %85, %84 : vector<16x16x8xf32>
    %87 = vector.broadcast %cst_63 : f32 to vector<16x16x8xf32>
    %88 = arith.minimumf %87, %86 : vector<16x16x8xf32>
    %89 = vector.shape_cast %88 : vector<16x16x8xf32> to vector<256x8xf32>
    %c0_64 = arith.constant 0 : index
    %c0_65 = arith.constant 0 : index
    %90 = vector.load %arg11[%c0_64, %c0_65] : memref<4x256xf32, #tpu.memory_space<vmem>>, vector<4x256xf32>
    %c0_66 = arith.constant 0 : index
    %c0_67 = arith.constant 0 : index
    %c0_68 = arith.constant 0 : index
    %91 = vector.load %arg7[%c0_66, %c0_67, %c0_68] : memref<1x4x8xf32, #tpu.memory_space<vmem>>, vector<1x4x8xf32>
    %92 = vector.shape_cast %91 : vector<1x4x8xf32> to vector<4x8xf32>
    %cst_69 = arith.constant dense<0.000000e+00> : vector<4x256xf32>
    %93 = tpu.matmul %92, %89, %cst_69 {dimension_numbers = #tpu.dot_dimension_numbers<[1], [1], [0], [0], [0, 0, 1, 0], [], []>} : vector<4x8xf32>, vector<256x8xf32>, vector<4x256xf32> -> vector<4x256xf32>
    %94 = arith.addf %90, %93 : vector<4x256xf32>
    %c0_70 = arith.constant 0 : index
    %c0_71 = arith.constant 0 : index
    %95 = vector.load %arg11[%c0_70, %c0_71] : memref<4x256xf32, #tpu.memory_space<vmem>>, vector<4x256xf32>
    tpu.vector_store %arg11[%c0_70, %c0_71], %94 {strides = array<i32>} : memref<4x256xf32, #tpu.memory_space<vmem>>, vector<4x256xf32>,
    %c1_i32 = arith.constant 1 : i32
    %96 = arith.cmpi eq, %arg1, %c1_i32 : i32
    %97 = arith.extui %96 : i1 to i32
    %c0_i32_72 = arith.constant 0 : i32
    %98 = arith.cmpi ne, %97, %c0_i32_72 : i32
    scf.if %98 {
      %c0_73 = arith.constant 0 : index
      %c0_74 = arith.constant 0 : index
      %99 = vector.load %arg11[%c0_73, %c0_74] : memref<4x256xf32, #tpu.memory_space<vmem>>, vector<4x256xf32>
      %c0_75 = arith.constant 0 : index
      %c0_76 = arith.constant 0 : index
      %100 = vector.load %arg8[%c0_75, %c0_76] : memref<4x1xf32, #tpu.memory_space<vmem>>, vector<4x1xf32>
      %101 = vector.broadcast %100 : vector<4x1xf32> to vector<4x256xf32>
      %102 = arith.addf %99, %101 : vector<4x256xf32>
      %103 = arith.addf %102, %4 : vector<4x256xf32>
      %c0_77 = arith.constant 0 : index
      %c0_78 = arith.constant 0 : index
      %c0_79 = arith.constant 0 : index
      %104 = vector.load %arg9[%c0_77, %c0_78, %c0_79] : memref<1x4x256xf32, #tpu.memory_space<vmem>>, vector<1x4x256xf32>
      %105 = vector.shape_cast %104 : vector<1x4x256xf32> to vector<4x256xf32>
      %106 = vector.shape_cast %103 : vector<4x256xf32> to vector<1x4x256xf32>
      tpu.vector_store %arg9[%c0_77, %c0_78, %c0_79], %106 {strides = array<i32>} : memref<1x4x256xf32, #tpu.memory_space<vmem>>, vector<1x4x256xf32>,
    } else {
    }
    return
  }
  func.func @transform_0(%arg0: i32, %arg1: i32) -> (i32, i32, i32) {
    %c0_i32 = arith.constant 0 : i32
    %c0_i32_0 = arith.constant 0 : i32
    %c0_i32_1 = arith.constant 0 : i32
    return %arg0, %c0_i32, %c0_i32_0 : i32, i32, i32
  }
  func.func @transform_1(%arg0: i32, %arg1: i32) -> (i32, i32, i32) {
    %c0_i32 = arith.constant 0 : i32
    %c0_i32_0 = arith.constant 0 : i32
    %c0_i32_1 = arith.constant 0 : i32
    return %arg1, %c0_i32, %c0_i32_0 : i32, i32, i32
  }
  func.func @transform_2(%arg0: i32, %arg1: i32) -> (i32, i32, i32) {
    %c0_i32 = arith.constant 0 : i32
    %c0_i32_0 = arith.constant 0 : i32
    %c0_i32_1 = arith.constant 0 : i32
    return %arg1, %c0_i32, %c0_i32_0 : i32, i32, i32
  }
  func.func @transform_3(%arg0: i32, %arg1: i32) -> (i32, i32, i32) {
    %c0_i32 = arith.constant 0 : i32
    %c0_i32_0 = arith.constant 0 : i32
    %c0_i32_1 = arith.constant 0 : i32
    return %arg1, %c0_i32, %c0_i32_0 : i32, i32, i32
  }
  func.func @transform_4(%arg0: i32, %arg1: i32) -> (i32, i32, i32) {
    %c0_i32 = arith.constant 0 : i32
    %c0_i32_0 = arith.constant 0 : i32
    %c0_i32_1 = arith.constant 0 : i32
    return %arg1, %c0_i32, %c0_i32_0 : i32, i32, i32
  }
  func.func @transform_5(%arg0: i32, %arg1: i32) -> (i32, i32, i32) {
    %c0_i32 = arith.constant 0 : i32
    %c0_i32_0 = arith.constant 0 : i32
    %c0_i32_1 = arith.constant 0 : i32
    return %arg1, %c0_i32, %c0_i32_0 : i32, i32, i32
  }
  func.func @transform_6(%arg0: i32, %arg1: i32) -> (i32, i32) {
    %c0_i32 = arith.constant 0 : i32
    %c0_i32_0 = arith.constant 0 : i32
    %c0_i32_1 = arith.constant 0 : i32
    return %c0_i32, %c0_i32_0 : i32, i32
  }
  func.func @transform_7(%arg0: i32, %arg1: i32) -> (i32, i32, i32) {
    %c0_i32 = arith.constant 0 : i32
    %c0_i32_0 = arith.constant 0 : i32
    %c0_i32_1 = arith.constant 0 : i32
    return %arg0, %c0_i32, %c0_i32_0 : i32, i32, i32
  }
}

</mosaic_0001>

<bundles_post_ra>
// kernel: tpu_custom_call.1
= control target key start
LH: loop header
LB: loop body
LE: loop exit
PB: predicated region body
PF: predicated region fallthrough
CT: control target
= control target key end

     0   :  { %s3905_s0 = inlined_call_operand.vmem [shape: f32[2,4,256], index: 0, kind: input, shape index: {}]   ;;  %s3906_s1 = inlined_call_operand.vmem [shape: f32[2,4,8], index: 1, kind: input, shape index: {}]   ;;  %s3907_s2 = inlined_call_operand.vmem [shape: f32[2,1,8], index: 2, kind: input, shape index: {}]   ;;  %s3908_s3 = inlined_call_operand.vmem [shape: f32[2,9,8], index: 3, kind: input, shape index: {}]   ;;  %s3909_s4 = inlined_call_operand.vmem [shape: f32[2,1,8], index: 4, kind: input, shape index: {}]   ;;  %s3910_s5 = inlined_call_operand.vmem [shape: f32[2,4,8], index: 5, kind: input, shape index: {}]   ;;  %s3911_s6 = inlined_call_operand.vmem [shape: f32[4,1], index: 6, kind: input, shape index: {}]   ;;  %s3912_s7 = inlined_call_operand.hbm [shape: f32[2,4,256], index: 7, kind: output, shape index: {}]  }
   0x1   :  { %3932 = sst [smem:[#allocation21_spill]] %s3905_s0 }
   0x2   :  { %3933 = sst [smem:[#allocation22_spill]] %s3906_s1 }
   0x3   :  { %12 = vsyncpa [#allocation5], 0 }
   0x4   :  { %14 = vsyncpa [#allocation5 + $0x1], 0  ;;  %s2735_s24 = smov 0   ;;  %s2737_s25 = smov 0  }
   0x5   :  { %s2739_s26 = smov 0   ;;  %s2741_s27 = smov 0  }
   0x6   :  { %s2743_s28 = smov 0   ;;  %s2745_s29 = smov 0  }
   0x7   :  { %s2747_s30 = smov 0   ;;  %s2749_s8 = smov 0  }
   0x8 LB: > { %3934 = sst [smem:[#allocation7_spill]] %s2669_s26  ;;  %s2242_s9 = sadd.s32 4294967295, %s2689_s8   ;;  %s2689_s8 = sphi %s2749_s8, %s20_s8   ;;  %s2685_s30 = sphi %s2747_s30, %s3972_s30   ;;  %s2681_s29 = sphi %s2745_s29, %s3971_s29   ;;  %s2677_s28 = sphi %s2743_s28, %s3970_s28   ;;  %s2673_s27 = sphi %s2741_s27, %s3976_s27   ;;  %s2669_s26 = sphi %s2739_s26, %s3975_s26   ;;  %s2665_s25 = sphi %s2737_s25, %s3974_s25   ;;  %s2661_s24 = sphi %s2735_s24, %s3973_s24  }
   0x9   : > { %3935 = sst [smem:[#allocation8_spill]] %s2681_s29  ;;  %s2243_s10 = sadd.s32 4294967294, %s2689_s8  }
   0xa   : > { %3936 = sst [smem:[#allocation9_spill]] %s2685_s30  ;;  %s29_s11 = sadd.s32 1, %s2681_s29 }
   0xb   : > { %p30_p0 = scmp.ge.s32.totalorder %s29_s11, 2  ;;  %s32_s12 = sadd.s32 1, %s2685_s30 }
   0xc   : > { %p226_p1 = scmp.ne.s32.totalorder %s2669_s26, %s2665_s25  ;;  %p227_p2 = scmp.eq.s32.totalorder %s2242_s9, 3 }
   0xd   : > { %s3978_s11 = smov (%p30_p0, %s29_s11), 0  ;;  %s3980_s12 = smov (!%p30_p0, %s32_s12), %s2685_s30 }
   0xe   : > { %3937 = sst [smem:[#allocation10_spill]] %s3978_s11  ;;  %p2784_p3 = por %p227_p2, %p226_p1 }
   0xf   : > { %p232_p4 = scmp.ne.s32.totalorder %s2665_s25, %s2661_s24  ;;  %p34_p5 = scmp.ge.s32.totalorder %s3980_s12, 2 }
  0x10   : > { %p233_p6 = scmp.eq.s32.totalorder %s2243_s10, 3  ;;  %p2246_p7 = scmp.ge.s32.totalorder %s2689_s8, 1 }
  0x11   : > { %p296_p8 = scmp.lt.s32.totalorder %s2689_s8, 5  ;;  %s3982_s12 = smov (%p34_p5, %s3980_s12), 0 }
  0x12   : > { %3939 = sst [smem:[#allocation11_spill]] %s3982_s12  ;;  %p2794_p9 = por %p233_p6, %p232_p4 }
  0x13   : > { %p297_p10 = pnand %p2246_p7, %p296_p8  ;;  %s213_s15 = ssub.s32 %s2685_s30, %s3982_s12 }
  0x14   : > { %s3940_s14 = scalar_select %p2794_p9, 1, 0 }
  0x15   : > { %s216_s16 = sadd.s32 1, %s2669_s26  ;;  %p214_p11 = scmp.eq.s32.totalorder %s213_s15, 0 }
  0x16   : > { %3941 = sst [smem:[#allocation12_spill]] %s3940_s14  ;;  %300 = sbr.rel (%p297_p10) target bundleno = 880 (0x370), region = 48 }
  0x17   : > { %s2802_s17 = scalar_select %p214_p11, %s2669_s26, %s216_s16  }
  0x19   : > { %3942 = sst [smem:[#allocation13_spill]] %s2802_s17 }
  0x1d   : > { %s3916_s18 = sand.u32 1, %s2665_s25   ;;  %p347_p12 = scmp.lt.s32.totalorder %s2677_s28, 1 }
  0x1e   : > { %s2808_s19 = sshll.u32 %s3916_s18, 3  ;;  %p352_p13 = scmp.lt.s32.totalorder %s2673_s27, 1 }
  0x1f   : > { %s348_s20 = scalar_select %p347_p12, %s2677_s28, 1 }
  0x20   : > { %s353_s21 = scalar_select %p352_p13, %s2673_s27, 1 }
  0x21   : > { %s2338_s22 = sshll.u32 %s348_s20, 3  ;;  %s3943_s0 = sld [smem:[#allocation21_spill]] }
  0x22   : > { %s2250_s15 = sshll.u32 %s353_s21, 2  ;;  %s3944_s1 = sld [smem:[#allocation22_spill]] }
  0x23   : > { %s2826_s18 = scalar_lea.vmem %s3907_s2, %s353_s21  ;;  %s2339_s17 = sshll.u32 %s353_s21, 4 }
  0x24   : > { %s2831_s20 = scalar_lea.vmem %s3909_s4, %s353_s21  ;;  %s2836_s9 = scalar_lea.vmem %s3908_s3, %s2339_s17 }
  0x25   : > { %s2841_s16 = scalar_lea.vmem %s3910_s5, %s2250_s15  ;;  %p2254_p0 = scmp.ne.s32.totalorder %s2673_s27, 0 }
  0x26   : > { %vm376_vm0 = vcmask (!%p2254_p0), 64512   ;;  %vm380_vm1 = vcmask (!%p2254_p0), 57344   ;;  %v2691_v0 = vmov (!%p2254_p0), 0.0  }
  0x27   : > { %s2816_s10 = scalar_lea.vmem %s3943_s0, %s2338_s22  ;;  %374 = sbr.rel (%p2254_p0) target bundleno = 62 (0x3e), region = 52  ;;  %377 = vst.msk [vmem:[#allocation2] sm:$0xff] (!%p2254_p0), %vm376_vm0, %v2691_v0  ;;  %375 = vst [vmem:[#allocation3] sm:$0xff] (!%p2254_p0), %v2691_v0 }
  0x28   : > { %s2821_s11 = scalar_lea.vmem %s3944_s1, %s2250_s15  ;;  %s346_s1 = scalar_lea.vmem [#allocation4], %s2808_s19  ;;  %378 = vst.msk [vmem:[#allocation2 + $0x8] sm:$0xff] (!%p2254_p0), %vm376_vm0, %v2691_v0  ;;  %379 = vst.msk [vmem:[#allocation2 + $0x10] sm:$0xff] (!%p2254_p0), %vm376_vm0, %v2691_v0 }
  0x29   : > { %383 = vst.msk [vmem:[#allocation2 + $0x220] sm:$0xff] (!%p2254_p0), %vm376_vm0, %v2691_v0  ;;  %384 = vst.msk [vmem:[#allocation2 + $0x228] sm:$0xff] (!%p2254_p0), %vm376_vm0, %v2691_v0 }
  0x2a   : > { %385 = vst.msk [vmem:[#allocation2 + $0x230] sm:$0xff] (!%p2254_p0), %vm376_vm0, %v2691_v0 }
  0x2b   : > { %381 = vst.msk [vmem:[#allocation2 + $0x18] sm:$0x1] (!%p2254_p0), %vm380_vm1, %v2691_v0  ;;  %386 = vst.msk [vmem:[#allocation2 + $0x238] sm:$0x1] (!%p2254_p0), %vm380_vm1, %v2691_v0 }
  0x2c   : > { %388 = vst.msk [vmem:[#allocation2 + $0x27] sm:$0x1] (!%p2254_p0), %vm380_vm1, %v2691_v0  ;;  %389 = vst.msk [vmem:[#allocation2 + $0x47] sm:$0x1] (!%p2254_p0), %vm380_vm1, %v2691_v0 }
  0x2d   : > { %390 = vst.msk [vmem:[#allocation2 + $0x67] sm:$0x1] (!%p2254_p0), %vm380_vm1, %v2691_v0  ;;  %391 = vst.msk [vmem:[#allocation2 + $0x87] sm:$0x1] (!%p2254_p0), %vm380_vm1, %v2691_v0 }
  0x2e   : > { %392 = vst.msk [vmem:[#allocation2 + $0xa7] sm:$0x1] %vm380_vm1, %v2691_v0  ;;  %393 = vst.msk [vmem:[#allocation2 + $0xc7] sm:$0x1] %vm380_vm1, %v2691_v0 }
  0x2f   : > { %394 = vst.msk [vmem:[#allocation2 + $0xe7] sm:$0x1] %vm380_vm1, %v2691_v0  ;;  %395 = vst.msk [vmem:[#allocation2 + $0x107] sm:$0x1] %vm380_vm1, %v2691_v0 }
  0x30   : > { %396 = vst.msk [vmem:[#allocation2 + $0x127] sm:$0x1] %vm380_vm1, %v2691_v0  ;;  %397 = vst.msk [vmem:[#allocation2 + $0x147] sm:$0x1] %vm380_vm1, %v2691_v0 }
  0x31   : > { %398 = vst.msk [vmem:[#allocation2 + $0x167] sm:$0x1] %vm380_vm1, %v2691_v0  ;;  %399 = vst.msk [vmem:[#allocation2 + $0x187] sm:$0x1] %vm380_vm1, %v2691_v0 }
  0x32   : > { %400 = vst.msk [vmem:[#allocation2 + $0x1a7] sm:$0x1] %vm380_vm1, %v2691_v0  ;;  %401 = vst.msk [vmem:[#allocation2 + $0x1c7] sm:$0x1] %vm380_vm1, %v2691_v0 }
  0x33   : > { %402 = vst.msk [vmem:[#allocation2 + $0x1e7] sm:$0x1] %vm380_vm1, %v2691_v0  ;;  %403 = vst.msk [vmem:[#allocation2 + $0x207] sm:$0x1] %vm380_vm1, %v2691_v0 }
  0x34   : > { %406 = vst.msk [vmem:[#allocation2 + $0x38] sm:$0x1] %vm380_vm1, %v2691_v0  ;;  %407 = vst.msk [vmem:[#allocation2 + $0x58] sm:$0x1] %vm380_vm1, %v2691_v0 }
  0x35   : > { %408 = vst.msk [vmem:[#allocation2 + $0x78] sm:$0x1] %vm380_vm1, %v2691_v0  ;;  %409 = vst.msk [vmem:[#allocation2 + $0x98] sm:$0x1] %vm380_vm1, %v2691_v0 }
  0x36   : > { %410 = vst.msk [vmem:[#allocation2 + $0xb8] sm:$0x1] %vm380_vm1, %v2691_v0  ;;  %411 = vst.msk [vmem:[#allocation2 + $0xd8] sm:$0x1] %vm380_vm1, %v2691_v0 }
  0x37   : > { %412 = vst.msk [vmem:[#allocation2 + $0xf8] sm:$0x1] %vm380_vm1, %v2691_v0  ;;  %413 = vst.msk [vmem:[#allocation2 + $0x118] sm:$0x1] %vm380_vm1, %v2691_v0 }
  0x38   : > { %414 = vst.msk [vmem:[#allocation2 + $0x138] sm:$0x1] %vm380_vm1, %v2691_v0  ;;  %415 = vst.msk [vmem:[#allocation2 + $0x158] sm:$0x1] %vm380_vm1, %v2691_v0 }
  0x39   : > { %416 = vst.msk [vmem:[#allocation2 + $0x178] sm:$0x1] %vm380_vm1, %v2691_v0  ;;  %417 = vst.msk [vmem:[#allocation2 + $0x198] sm:$0x1] %vm380_vm1, %v2691_v0 }
  0x3a   : > { %418 = vst.msk [vmem:[#allocation2 + $0x1b8] sm:$0x1] %vm380_vm1, %v2691_v0  ;;  %419 = vst.msk [vmem:[#allocation2 + $0x1d8] sm:$0x1] %vm380_vm1, %v2691_v0 }
  0x3b   : > { %420 = vst.msk [vmem:[#allocation2 + $0x1f8] sm:$0x1] %vm380_vm1, %v2691_v0  ;;  %421 = vst.msk [vmem:[#allocation2 + $0x218] sm:$0x1] %vm380_vm1, %v2691_v0 }
  0x3c   : > { %387 = vst.msk [vmem:[#allocation2 + $0x7] sm:$0x1] %vm380_vm1, %v2691_v0  ;;  %404 = vst.msk [vmem:[#allocation2 + $0x227] sm:$0x1] %vm380_vm1, %v2691_v0 }
  0x3d   : > { %405 = vst.msk [vmem:[#allocation2 + $0x18] sm:$0x1] %vm380_vm1, %v2691_v0  ;;  %422 = vst.msk [vmem:[#allocation2 + $0x238] sm:$0x1] %vm380_vm1, %v2691_v0 }
  0x3e PF: > { %v2884_v1 = vld [vmem:[%s2816_s10] sm:$0xff]  ;;  %vm596_vm2 = vcmask 1043456   ;;  %vm499_vm3 = vcmask 31744   ;;  %vm890_vm4 = vcmask 64512   ;;  %p2332_p1 = scmp.ne.s32.totalorder %s2673_s27, 1 }
  0x3f   : > { %3945 = vst [vmem:[#allocation14_spill] sm:$0xff] %v2884_v1  ;;  %435 = vxpose.xlu0.b32.start.end [1/1] (short) %v2884_v1, 128  ;;  %v424_v2 = vld [vmem:[%s2821_s11] sm:$0xf]  ;;  %v433_v3 = vcombine.high %v2884_v1, %v2884_v1  ;;  %v931_v39 = vld [vmem:[#allocation2 + $0xf] sm:$0xff]  ;;  %vm3338_vm5 = vmpackc.low %vm890_vm4, %vm890_vm4 }
  0x40   : > { %2408 = vmatprep.subr.msk.mxu0 %vm596_vm2, %v424_v2  ;;  %v2923_v36 = vld [vmem:[%s2826_s18] ss:$0 sm:$0xff]  ;;  %v2935_v46 = vld [vmem:[%s2836_s9 + $0x1] ss:$0 sm:$0xff]  ;;  %v1031_v48 = vld [vmem:[#allocation2 + $0x8] sm:$0xff] }
  0x41   : > { %2409 = vmatpush3.msk.msra.mxu0 %vm596_vm2, %v424_v2  ;;  %v2926_v37 = vld [vmem:[%s2836_s9] ss:$0 sm:$0xff]  ;;  %v1032_v50 = vld [vmem:[#allocation2 + $0x10] sm:$0xff]  ;;  %v1068_v54 = vmul.f32 %v2935_v46, %v1031_v48  ;;  %v2944_v58 = vld [vmem:[%s2836_s9 + $0x2] ss:$0 sm:$0xff] }
  0x42   : > { %v2932_v45 = vld [vmem:[%s2831_s20] ss:$0 sm:$0xff]  ;;  %v968_v47 = vmul.f32 %v2926_v37, %v931_v39  ;;  %v1069_v57 = vmul.f32 %v2935_v46, %v1032_v50  ;;  %v1132_v59 = vld [vmem:[#allocation2 + $0x9] sm:$0xff] }
  0x43   : > { %v930_v38 = vld [vmem:[#allocation2 + $0x7] sm:$0xff] }
  0x44   : > { %v967_v43 = vmul.f32 %v2926_v37, %v930_v38  ;;  %v1000_v56 = vadd.f32 %v2932_v45, %v968_v47  ;;  %v1133_v60 = vld [vmem:[#allocation2 + $0x11] sm:$0xff]  ;;  %v2981_v47 = vld [vmem:[%s2836_s9 + $0x8] ss:$0 sm:$0xff] }
  0x46   : > { %v999_v53 = vadd.f32 %v2932_v45, %v967_v43 }
  0x48   : > { %v1100_v0 = vadd.f32 %v1068_v54, %v999_v53 }
  0x7c   : > { %467 = vxpose.xlu0.b32.start.end [1/1] (short) %v433_v3, 128  ;;  %v1101_v3 = vadd.f32 %v1069_v57, %v1000_v56 }
  0xbf   : > { %v451_v4 = vpop.trf.xlu0 }
  0xc0   : > { %2410 = vmatprep.mubr.msk.f32.mxu0 %vm499_vm3, %v451_v4  ;;  %v1169_v4 = vmul.f32 %v2944_v58, %v1132_v59 }
  0xc3   : > { %v452_v5 = vpop.trf.xlu0 }
  0xc4   : > { %2411 = vmatmul.mubr.msk.f32.vlgmr.msra.gmra.mrb[0].mxu0 %vm499_vm3, %v452_v5  ;;  %v1170_v5 = vmul.f32 %v2944_v58, %v1133_v60 }
  0xc7   : > { %v453_v6 = vpop.trf.xlu0 }
  0xc8   : > { %2413 = vmatprep.mubr.msk.f32.mxu0 %vm499_vm3, %v453_v6 }
  0xcb   : > { %v454_v7 = vpop.trf.xlu0 }
  0xcc   : > { %2414 = vmatmul.mubr.msk.f32.gmra.mrb[2].mxu0 %vm499_vm3, %v454_v7 }
  0xcf   : > { %v455_v8 = vpop.trf.xlu0 }
  0xd0   : > { %2416 = vmatprep.mubr.msk.f32.mxu0 %vm499_vm3, %v455_v8  ;;  %v2952_v8 = vld [vmem:[%s2836_s9 + $0x4] ss:$0 sm:$0xff] }
  0xd3   : > { %v456_v9 = vpop.trf.xlu0 }
  0xd4   : > { %2417 = vmatmul.mubr.msk.f32.gmra.mrb[4].mxu0 %vm499_vm3, %v456_v9  ;;  %v2955_v9 = vld [vmem:[%s2836_s9 + $0x5] ss:$0 sm:$0xff] }
  0xd7   : > { %v457_v10 = vpop.trf.xlu0 }
  0xd8   : > { %2419 = vmatprep.mubr.msk.f32.mxu0 %vm499_vm3, %v457_v10 }
  0xdb   : > { %v458_v11 = vpop.trf.xlu0 }
  0xdc   : > { %2420 = vmatmul.mubr.msk.f32.gmra.mrb[6].mxu0 %vm499_vm3, %v458_v11  ;;  %v2958_v11 = vld [vmem:[%s2836_s9 + $0x3] ss:$0 sm:$0xff] }
  0xdf   : > { %v459_v12 = vpop.trf.xlu0 }
  0xe0   : > { %2422 = vmatprep.mubr.msk.f32.mxu0 %vm499_vm3, %v459_v12 }
  0xe3   : > { %v460_v13 = vpop.trf.xlu0 }
  0xe4   : > { %2423 = vmatmul.mubr.msk.f32.gmra.mrb[8].mxu0 %vm499_vm3, %v460_v13  ;;  %v1201_v13 = vadd.f32 %v1169_v4, %v1100_v0 }
  0xe7   : > { %v461_v14 = vpop.trf.xlu0 }
  0xe8   : > { %2425 = vmatprep.mubr.msk.f32.mxu0 %vm499_vm3, %v461_v14  ;;  %v1202_v14 = vadd.f32 %v1170_v5, %v1101_v3 }
  0xeb   : > { %v462_v15 = vpop.trf.xlu0 }
  0xec   : > { %2426 = vmatmul.mubr.msk.f32.gmra.mrb[10].mxu0 %vm499_vm3, %v462_v15 }
  0xef   : > { %v463_v16 = vpop.trf.xlu0 }
  0xf0   : > { %2428 = vmatprep.mubr.msk.f32.mxu0 %vm499_vm3, %v463_v16 }
  0xf3   : > { %v464_v17 = vpop.trf.xlu0 }
  0xf4   : > { %2429 = vmatmul.mubr.msk.f32.gmra.mrb[12].mxu0 %vm499_vm3, %v464_v17 }
  0xf7   : > { %v465_v18 = vpop.trf.xlu0 }
  0xf8   : > { %2431 = vmatprep.mubr.msk.f32.mxu0 %vm499_vm3, %v465_v18 }
  0xfb   : > { %v466_v19 = vpop.trf.xlu0 }
  0xfc   : > { %2432 = vmatmul.mubr.msk.f32.gmra.mrb[14].mxu0 %vm499_vm3, %v466_v19 }
  0xff   : > { %v483_v20 = vpop.trf.xlu0 }
 0x100   : > { %2434 = vmatprep.mubr.msk.f32.mxu0 %vm499_vm3, %v483_v20 }
 0x103   : > { %v484_v21 = vpop.trf.xlu0 }
 0x104   : > { %2435 = vmatmul.mubr.msk.f32.gmra.mrb[16].mxu0 %vm499_vm3, %v484_v21 }
 0x107   : > { %v485_v22 = vpop.trf.xlu0 }
 0x108   : > { %2437 = vmatprep.mubr.msk.f32.mxu0 %vm499_vm3, %v485_v22 }
 0x10b   : > { %v486_v23 = vpop.trf.xlu0 }
 0x10c   : > { %2438 = vmatmul.mubr.msk.f32.gmra.mrb[18].mxu0 %vm499_vm3, %v486_v23 }
 0x10f   : > { %v487_v24 = vpop.trf.xlu0 }
 0x110   : > { %2440 = vmatprep.mubr.msk.f32.mxu0 %vm499_vm3, %v487_v24 }
 0x113   : > { %v488_v25 = vpop.trf.xlu0 }
 0x114   : > { %2441 = vmatmul.mubr.msk.f32.gmra.mrb[20].mxu0 %vm499_vm3, %v488_v25 }
 0x117   : > { %v489_v26 = vpop.trf.xlu0 }
 0x118   : > { %2443 = vmatprep.mubr.msk.f32.mxu0 %vm499_vm3, %v489_v26 }
 0x11b   : > { %v490_v27 = vpop.trf.xlu0 }
 0x11c   : > { %2444 = vmatmul.mubr.msk.f32.gmra.mrb[22].mxu0 %vm499_vm3, %v490_v27 }
 0x11f   : > { %v491_v28 = vpop.trf.xlu0 }
 0x120   : > { %2446 = vmatprep.mubr.msk.f32.mxu0 %vm499_vm3, %v491_v28 }
 0x123   : > { %v492_v29 = vpop.trf.xlu0 }
 0x124   : > { %2447 = vmatmul.mubr.msk.f32.gmra.mrb[24].mxu0 %vm499_vm3, %v492_v29 }
 0x127   : > { %v493_v30 = vpop.trf.xlu0 }
 0x128   : > { %2449 = vmatprep.mubr.msk.f32.mxu0 %vm499_vm3, %v493_v30 }
 0x12b   : > { %v494_v31 = vpop.trf.xlu0 }
 0x12c   : > { %2450 = vmatmul.mubr.msk.f32.gmra.mrb[26].mxu0 %vm499_vm3, %v494_v31 }
 0x12f   : > { %v495_v32 = vpop.trf.xlu0 }
 0x130   : > { %2452 = vmatprep.mubr.msk.f32.mxu0 %vm499_vm3, %v495_v32 }
 0x133   : > { %v496_v33 = vpop.trf.xlu0 }
 0x134   : > { %2453 = vmatmul.mubr.msk.f32.gmra.mrb[28].mxu0 %vm499_vm3, %v496_v33 }
 0x137   : > { %v497_v34 = vpop.trf.xlu0 }
 0x138   : > { %2455 = vmatprep.mubr.msk.f32.mxu0 %vm499_vm3, %v497_v34 }
 0x13b   : > { %v498_v35 = vpop.trf.xlu0 }
 0x13c   : > { %2456 = vmatmul.mubr.msk.f32.gmra.mrb[30].mxu0 %vm499_vm3, %v498_v35 }
 0x197   : > { %v2412_v40 = vpop.f32.mrb[0].mxu0 }
 0x198   : > { %v672_v41 = vadd.f32 %v2412_v40, %v2923_v36  ;;  %v666_v42 = vpop.f32.mrb[1].mxu0 }
 0x199   : > { %v667_v44 = vadd.f32 %v2923_v36, %v666_v42 }
 0x19a   : > { %v826_v49 = vmax.f32 %v672_v41, 0.0 }
 0x19b   : > { %v825_v51 = vmax.f32 %v667_v44, 0.0  ;;  %v2978_v44 = vld [vmem:[%s2836_s9 + $0x7] ss:$0 sm:$0xff] }
 0x19c   : > { %v858_v52 = vmin.f32 %v826_v49, 6.0 }
 0x19d   : > { %v857_v55 = vmin.f32 %v825_v51, 6.0 }
 0x19e   : > { %892 = vst.msk [vmem:[#allocation2 + $0x30] sm:$0xff] %vm890_vm4, %v858_v52  ;;  %v2984_v52 = vld [vmem:[%s2836_s9 + $0x6] ss:$0 sm:$0xff] }
 0x19f   : > { %891 = vst.msk [vmem:[#allocation2 + $0x28] sm:$0xff] %vm890_vm4, %v857_v55  ;;  %v2415_v61 = vpop.f32.mrb[2].mxu0 }
 0x1a0   : > { %v682_v62 = vadd.f32 %v2415_v61, %v2923_v36  ;;  %v676_v63 = vpop.f32.mrb[3].mxu0 }
 0x1a1   : > { %v677_v2 = vadd.f32 %v2923_v36, %v676_v63 }
 0x1a2   : > { %v828_v6 = vmax.f32 %v682_v62, 0.0 }
 0x1a3   : > { %v827_v7 = vmax.f32 %v677_v2, 0.0 }
 0x1a4   : > { %v860_v10 = vmin.f32 %v828_v6, 6.0 }
 0x1a5   : > { %v859_v12 = vmin.f32 %v827_v7, 6.0  ;;  %v1335_v15 = vld [vmem:[#allocation2 + $0x30] sm:$0xff] }
 0x1a6   : > { %v1436_v16 = vld [vmem:[#allocation2 + $0x31] sm:$0xff]  ;;  %894 = vst.msk [vmem:[#allocation2 + $0x50] sm:$0xff] %vm890_vm4, %v860_v10  ;;  %v1233_v17 = vld [vmem:[#allocation2 + $0x27] sm:$0xff]  ;;  %v1372_v20 = vmul.f32 %v2952_v8, %v1335_v15  ;;  %v1071_v27 = vmul.f32 %v2935_v46, %v1335_v15 }
 0x1a7   : > { %v1234_v18 = vld [vmem:[#allocation2 + $0x2f] sm:$0xff]  ;;  %v1473_v21 = vmul.f32 %v2955_v9, %v1436_v16  ;;  %893 = vst.msk [vmem:[#allocation2 + $0x48] sm:$0xff] %vm890_vm4, %v859_v12  ;;  %v2418_v22 = vpop.f32.mrb[4].mxu0  ;;  %v1270_v23 = vmul.f32 %v2958_v11, %v1233_v17  ;;  %v969_v26 = vmul.f32 %v2926_v37, %v1233_v17  ;;  %v1172_v54 = vmul.f32 %v2944_v58, %v1436_v16 }
 0x1a8   : > { %v1334_v19 = vld [vmem:[#allocation2 + $0x28] sm:$0xff]  ;;  %v1271_v24 = vmul.f32 %v2958_v11, %v1234_v18  ;;  %v692_v28 = vadd.f32 %v2418_v22, %v2923_v36  ;;  %v686_v29 = vpop.f32.mrb[5].mxu0  ;;  %v970_v31 = vmul.f32 %v2926_v37, %v1234_v18 }
 0x1a9   : > { %v1435_v25 = vld [vmem:[#allocation2 + $0x29] sm:$0xff]  ;;  %v1371_v30 = vmul.f32 %v2952_v8, %v1334_v19  ;;  %v1070_v32 = vmul.f32 %v2935_v46, %v1334_v19  ;;  %v687_v33 = vadd.f32 %v2923_v36, %v686_v29  ;;  %v1302_v34 = vadd.f32 %v1270_v23, %v1201_v13 }
 0x1aa   : > { %v1303_v35 = vadd.f32 %v1271_v24, %v1202_v14  ;;  %v1001_v38 = vadd.f32 %v2932_v45, %v969_v26  ;;  %v830_v39 = vmax.f32 %v692_v28, 0.0  ;;  %v1472_v40 = vmul.f32 %v2955_v9, %v1435_v25 }
 0x1ab   : > { %v1002_v41 = vadd.f32 %v2932_v45, %v970_v31  ;;  %v1171_v42 = vmul.f32 %v2944_v58, %v1435_v25  ;;  %v829_v43 = vmax.f32 %v687_v33, 0.0  ;;  %v1403_v48 = vadd.f32 %v1371_v30, %v1302_v34 }
 0x1ac   : > { %v1404_v49 = vadd.f32 %v1372_v20, %v1303_v35  ;;  %v1102_v50 = vadd.f32 %v1070_v32, %v1001_v38  ;;  %v862_v51 = vmin.f32 %v830_v39, 6.0 }
 0x1ad   : > { %v1103_v53 = vadd.f32 %v1071_v27, %v1002_v41  ;;  %v861_v55 = vmin.f32 %v829_v43, 6.0  ;;  %v1504_v56 = vadd.f32 %v1472_v40, %v1403_v48  ;;  %v2987_v59 = vld [vmem:[#allocation2 + $0x50] sm:$0xff] }
 0x1ae   : > { %v1505_v57 = vadd.f32 %v1473_v21, %v1404_v49  ;;  %v2989_v60 = vld [vmem:[#allocation2 + $0x51] sm:$0xff]  ;;  %v1203_v61 = vadd.f32 %v1171_v42, %v1102_v50  ;;  %896 = vst.msk [vmem:[#allocation2 + $0x70] sm:$0xff] %vm890_vm4, %v862_v51  ;;  %v1537_v62 = vld [vmem:[#allocation2 + $0x47] sm:$0xff]  ;;  %v1676_v2 = vmul.f32 %v2978_v44, %v2987_v59  ;;  %v1374_v5 = vmul.f32 %v2952_v8, %v2987_v59 }
 0x1af   : > { %v1538_v63 = vld [vmem:[#allocation2 + $0x4f] sm:$0xff]  ;;  %v1777_v3 = vmul.f32 %v2981_v47, %v2989_v60  ;;  %v1204_v4 = vadd.f32 %v1172_v54, %v1103_v53  ;;  %895 = vst.msk [vmem:[#allocation2 + $0x68] sm:$0xff] %vm890_vm4, %v861_v55  ;;  %v2421_v6 = vpop.f32.mrb[6].mxu0  ;;  %v1574_v7 = vmul.f32 %v2984_v52, %v1537_v62  ;;  %v1272_v14 = vmul.f32 %v2958_v11, %v1537_v62 }
 0x1b0   : > { %v2992_v0 = vld [vmem:[#allocation2 + $0x48] sm:$0xff]  ;;  %v1575_v10 = vmul.f32 %v2984_v52, %v1538_v63  ;;  %v702_v15 = vadd.f32 %v2421_v6, %v2923_v36  ;;  %v696_v16 = vpop.f32.mrb[7].mxu0  ;;  %v1273_v18 = vmul.f32 %v2958_v11, %v1538_v63  ;;  %v1475_v27 = vmul.f32 %v2955_v9, %v2989_v60 }
 0x1b1   : > { %v1675_v12 = vmul.f32 %v2978_v44, %v2992_v0  ;;  %v1739_v13 = vld [vmem:[#allocation2 + $0x49] sm:$0xff]  ;;  %v1373_v19 = vmul.f32 %v2952_v8, %v2992_v0  ;;  %v697_v20 = vadd.f32 %v2923_v36, %v696_v16  ;;  %v1606_v21 = vadd.f32 %v1574_v7, %v1504_v56 }
 0x1b2   : > { %v1776_v17 = vmul.f32 %v2981_v47, %v1739_v13  ;;  %v1607_v22 = vadd.f32 %v1575_v10, %v1505_v57  ;;  %v1304_v23 = vadd.f32 %v1272_v14, %v1203_v61  ;;  %v832_v24 = vmax.f32 %v702_v15, 0.0 }
 0x1b3   : > { %v1305_v25 = vadd.f32 %v1273_v18, %v1204_v4  ;;  %v1474_v26 = vmul.f32 %v2955_v9, %v1739_v13  ;;  %v831_v28 = vmax.f32 %v697_v20, 0.0  ;;  %v1707_v29 = vadd.f32 %v1675_v12, %v1606_v21 }
 0x1b4   : > { %v1708_v30 = vadd.f32 %v1676_v2, %v1607_v22  ;;  %v1405_v31 = vadd.f32 %v1373_v19, %v1304_v23  ;;  %v864_v32 = vmin.f32 %v832_v24, 6.0  ;;  %v971_v34 = vmul.f32 %v2926_v37, %v1537_v62 }
 0x1b5   : > { %v1406_v33 = vadd.f32 %v1374_v5, %v1305_v25  ;;  %v972_v35 = vmul.f32 %v2926_v37, %v1538_v63  ;;  %v863_v38 = vmin.f32 %v831_v28, 6.0  ;;  %v1808_v39 = vadd.f32 %v1776_v17, %v1707_v29  ;;  %v3017_v42 = vld [vmem:[#allocation2 + $0x70] sm:$0xff] }
 0x1b6   : > { %v1809_v40 = vadd.f32 %v1777_v3, %v1708_v30  ;;  %v1506_v41 = vadd.f32 %v1474_v26, %v1405_v31  ;;  %v3019_v43 = vld [vmem:[#allocation2 + $0x71] sm:$0xff]  ;;  %898 = vst.msk [vmem:[#allocation2 + $0x90] sm:$0xff] %vm890_vm4, %v864_v32  ;;  %v3022_v49 = vld [vmem:[#allocation2 + $0x67] sm:$0xff]  ;;  %v1678_v53 = vmul.f32 %v2978_v44, %v3017_v42  ;;  %v1003_v55 = vadd.f32 %v2932_v45, %v971_v34 }
 0x1b7   : > { %v1507_v48 = vadd.f32 %v1475_v27, %v1406_v33  ;;  %v3024_v50 = vld [vmem:[#allocation2 + $0x6f] sm:$0xff]  ;;  %v1779_v54 = vmul.f32 %v2981_v47, %v3019_v43  ;;  %897 = vst.msk [vmem:[#allocation2 + $0x88] sm:$0xff] %vm890_vm4, %v863_v38  ;;  %v2424_v56 = vpop.f32.mrb[8].mxu0  ;;  %v1840_v57 = vmax.f32 %v1808_v39, 0.0  ;;  %v1576_v62 = vmul.f32 %v2984_v52, %v3022_v49 }
 0x1b8   : > { %v3026_v51 = vld [vmem:[#allocation2 + $0x68] sm:$0xff]  ;;  %v1841_v61 = vmax.f32 %v1809_v40, 0.0  ;;  %v1577_v63 = vmul.f32 %v2984_v52, %v3024_v50  ;;  %v712_v3 = vadd.f32 %v2424_v56, %v2923_v36  ;;  %v706_v4 = vpop.f32.mrb[9].mxu0  ;;  %v1004_v7 = vadd.f32 %v2932_v45, %v972_v35 }
 0x1b9   : > { %v3038_v2 = vld [vmem:[#allocation2 + $0x69] sm:$0xff]  ;;  %v1677_v5 = vmul.f32 %v2978_v44, %v3026_v51  ;;  %v707_v10 = vadd.f32 %v2923_v36, %v706_v4  ;;  %v3047_v12 = vmin.f32 %v1840_v57, 6.0  ;;  %v1608_v15 = vadd.f32 %v1576_v62, %v1506_v41 }
 0x1ba   : > { %v1778_v6 = vmul.f32 %v2981_v47, %v3038_v2  ;;  %v3049_v14 = vmin.f32 %v1841_v61, 6.0  ;;  %v834_v16 = vmax.f32 %v712_v3, 0.0  ;;  %v1609_v17 = vadd.f32 %v1577_v63, %v1507_v48 }
 0x1bb   : > { %v1072_v18 = vmul.f32 %v2935_v46, %v2992_v0  ;;  %v1073_v19 = vmul.f32 %v2935_v46, %v2987_v59  ;;  %v833_v20 = vmax.f32 %v707_v10, 0.0  ;;  %v1709_v22 = vadd.f32 %v1677_v5, %v1608_v15 }
 0x1bc   : > { %v1173_v23 = vmul.f32 %v2944_v58, %v1739_v13  ;;  %v866_v24 = vmin.f32 %v834_v16, 6.0  ;;  %v1710_v25 = vadd.f32 %v1678_v53, %v1609_v17  ;;  %v1174_v30 = vmul.f32 %v2944_v58, %v2989_v60 }
 0x1bd   : > { %v1104_v26 = vadd.f32 %v1072_v18, %v1003_v55  ;;  %v1105_v27 = vadd.f32 %v1073_v19, %v1004_v7  ;;  %v865_v28 = vmin.f32 %v833_v20, 6.0  ;;  %v1810_v29 = vadd.f32 %v1778_v6, %v1709_v22  ;;  %v3081_v57 = vld [vmem:[#allocation2 + $0x90] sm:$0xff] }
 0x1be   : > { %v1274_v0 = vmul.f32 %v2958_v11, %v3022_v49  ;;  %900 = vst.msk [vmem:[#allocation2 + $0xb0] sm:$0xff] %vm890_vm4, %v866_v24  ;;  %v1811_v59 = vadd.f32 %v1779_v54, %v1710_v25  ;;  %v1275_v32 = vmul.f32 %v2958_v11, %v3024_v50  ;;  %v1375_v13 = vmul.f32 %v2952_v8, %v3026_v51  ;;  %v3067_v33 = vld [vmem:[#allocation2 + $0x87] sm:$0xff]  ;;  %v3074_v40 = vld [vmem:[#allocation2 + $0x8f] sm:$0xff] }
 0x1bf   : > { %v1205_v31 = vadd.f32 %v1173_v23, %v1104_v26  ;;  %899 = vst.msk [vmem:[#allocation2 + $0xa8] sm:$0xff] %vm890_vm4, %v865_v28  ;;  %v2427_v34 = vpop.f32.mrb[10].mxu0  ;;  %v1842_v35 = vmax.f32 %v1810_v29, 0.0  ;;  %v1206_v60 = vadd.f32 %v1174_v30, %v1105_v27  ;;  %v1376_v38 = vmul.f32 %v2952_v8, %v3017_v42  ;;  %v3079_v56 = vld [vmem:[#allocation2 + $0x88] sm:$0xff]  ;;  %v3094_v15 = vld [vmem:[#allocation2 + $0x91] sm:$0xff] }
 0x1c0   : > { %v1476_v39 = vmul.f32 %v2955_v9, %v3038_v2  ;;  %v722_v41 = vadd.f32 %v2427_v34, %v2923_v36  ;;  %v716_v48 = vpop.f32.mrb[11].mxu0  ;;  %v1843_v53 = vmax.f32 %v1811_v59, 0.0  ;;  %v1477_v55 = vmul.f32 %v2955_v9, %v3019_v43  ;;  %v3088_v4 = vld [vmem:[#allocation2 + $0x89] sm:$0xff] }
 0x1c1   : > { %v1306_v54 = vadd.f32 %v1274_v0, %v1205_v31  ;;  %v717_v61 = vadd.f32 %v2923_v36, %v716_v48  ;;  %v3084_v62 = vmin.f32 %v1842_v35, 6.0  ;;  %v1307_v63 = vadd.f32 %v1275_v32, %v1206_v60 }
 0x1c2   : > { %v1578_v3 = vmul.f32 %v2984_v52, %v3067_v33  ;;  %v836_v5 = vmax.f32 %v722_v41, 0.0  ;;  %v3090_v6 = vmin.f32 %v1843_v53, 6.0  ;;  %v1579_v10 = vmul.f32 %v2984_v52, %v3074_v40 }
 0x1c3   : > { %v1407_v7 = vadd.f32 %v1375_v13, %v1306_v54  ;;  %v835_v16 = vmax.f32 %v717_v61, 0.0  ;;  %v1408_v17 = vadd.f32 %v1376_v38, %v1307_v63  ;;  %v1679_v18 = vmul.f32 %v2978_v44, %v3079_v56 }
 0x1c4   : > { %v1680_v19 = vmul.f32 %v2978_v44, %v3081_v57  ;;  %v868_v20 = vmin.f32 %v836_v5, 6.0  ;;  %v1780_v24 = vmul.f32 %v2981_v47, %v3088_v4  ;;  %v1781_v27 = vmul.f32 %v2981_v47, %v3094_v15 }
 0x1c5   : > { %v1508_v23 = vadd.f32 %v1476_v39, %v1407_v7  ;;  %v867_v25 = vmin.f32 %v835_v16, 6.0  ;;  %v1509_v26 = vadd.f32 %v1477_v55, %v1408_v17  ;;  %v973_v28 = vmul.f32 %v2926_v37, %v3022_v49 }
 0x1c6   : > { %902 = vst.msk [vmem:[#allocation2 + $0xd0] sm:$0xff] %vm890_vm4, %v868_v20  ;;  %v974_v30 = vmul.f32 %v2926_v37, %v3024_v50  ;;  %v1074_v0 = vmul.f32 %v2935_v46, %v3026_v51  ;;  %v1075_v59 = vmul.f32 %v2935_v46, %v3017_v42  ;;  %v1175_v49 = vmul.f32 %v2944_v58, %v3038_v2  ;;  %v3132_v5 = vld [vmem:[#allocation2 + $0xa7] sm:$0xff]  ;;  %v3134_v7 = vld [vmem:[#allocation2 + $0xaf] sm:$0xff] }
 0x1c7   : > { %v1610_v29 = vadd.f32 %v1578_v3, %v1508_v23  ;;  %901 = vst.msk [vmem:[#allocation2 + $0xc8] sm:$0xff] %vm890_vm4, %v867_v25  ;;  %v2430_v31 = vpop.f32.mrb[12].mxu0  ;;  %v1611_v32 = vadd.f32 %v1579_v10, %v1509_v26  ;;  %v1005_v13 = vadd.f32 %v2932_v45, %v973_v28  ;;  %v1176_v34 = vmul.f32 %v2944_v58, %v3019_v43  ;;  %v3140_v20 = vld [vmem:[#allocation2 + $0xb0] sm:$0xff] }
 0x1c8   : > { %v732_v50 = vadd.f32 %v2430_v31, %v2923_v36  ;;  %v726_v35 = vpop.f32.mrb[13].mxu0  ;;  %v1006_v51 = vadd.f32 %v2932_v45, %v974_v30  ;;  %v1276_v42 = vmul.f32 %v2958_v11, %v3067_v33  ;;  %v1277_v48 = vmul.f32 %v2958_v11, %v3074_v40  ;;  %v3146_v28 = vld [vmem:[#allocation2 + $0xb1] sm:$0xff] }
 0x1c9   : > { %v1711_v60 = vadd.f32 %v1679_v18, %v1610_v29  ;;  %v727_v38 = vadd.f32 %v2923_v36, %v726_v35  ;;  %v1712_v39 = vadd.f32 %v1680_v19, %v1611_v32  ;;  %v1106_v41 = vadd.f32 %v1074_v0, %v1005_v13  ;;  %v3138_v19 = vld [vmem:[#allocation2 + $0xa8] sm:$0xff] }
 0x1ca   : > { %v838_v2 = vmax.f32 %v732_v50, 0.0  ;;  %v1107_v54 = vadd.f32 %v1075_v59, %v1006_v51  ;;  %v1377_v43 = vmul.f32 %v2952_v8, %v3079_v56  ;;  %v1378_v3 = vmul.f32 %v2952_v8, %v3081_v57 }
 0x1cb   : > { %v1812_v53 = vadd.f32 %v1780_v24, %v1711_v60  ;;  %v837_v55 = vmax.f32 %v727_v38, 0.0  ;;  %v1813_v61 = vadd.f32 %v1781_v27, %v1712_v39  ;;  %v1207_v63 = vadd.f32 %v1175_v49, %v1106_v41  ;;  %v3144_v27 = vld [vmem:[#allocation2 + $0xa9] sm:$0xff] }
 0x1cc   : > { %v870_v10 = vmin.f32 %v838_v2, 6.0  ;;  %v1208_v17 = vadd.f32 %v1176_v34, %v1107_v54  ;;  %v1478_v18 = vmul.f32 %v2955_v9, %v3088_v4  ;;  %v1479_v26 = vmul.f32 %v2955_v9, %v3094_v15 }
 0x1cd   : > { %v1844_v16 = vmax.f32 %v1812_v53, 0.0  ;;  %v869_v23 = vmin.f32 %v837_v55, 6.0  ;;  %v1845_v24 = vmax.f32 %v1813_v61, 0.0  ;;  %v1308_v25 = vadd.f32 %v1276_v42, %v1207_v63 }
 0x1ce   : > { %904 = vst.msk [vmem:[#allocation2 + $0xf0] sm:$0xff] %vm890_vm4, %v870_v10  ;;  %v1309_v30 = vadd.f32 %v1277_v48, %v1208_v17  ;;  %v1580_v0 = vmul.f32 %v2984_v52, %v3132_v5  ;;  %v1581_v59 = vmul.f32 %v2984_v52, %v3134_v7  ;;  %v1681_v49 = vmul.f32 %v2978_v44, %v3138_v19 }
 0x1cf   : > { %v3149_v29 = vmin.f32 %v1844_v16, 6.0  ;;  %903 = vst.msk [vmem:[#allocation2 + $0xe8] sm:$0xff] %vm890_vm4, %v869_v23  ;;  %v2433_v31 = vpop.f32.mrb[14].mxu0  ;;  %v3156_v32 = vmin.f32 %v1845_v24, 6.0  ;;  %v1409_v13 = vadd.f32 %v1377_v43, %v1308_v25  ;;  %v1682_v34 = vmul.f32 %v2978_v44, %v3140_v20 }
 0x1d0   : > { %v742_v50 = vadd.f32 %v2433_v31, %v2923_v36  ;;  %v736_v35 = vpop.f32.mrb[15].mxu0  ;;  %v1410_v60 = vadd.f32 %v1378_v3, %v1309_v30  ;;  %v1782_v51 = vmul.f32 %v2981_v47, %v3144_v27  ;;  %v1783_v42 = vmul.f32 %v2981_v47, %v3146_v28  ;;  %v3194_v31 = vld [vmem:[#allocation2 + $0xc7] sm:$0xff] }
 0x1d1   : > { %v737_v38 = vadd.f32 %v2923_v36, %v736_v35  ;;  %v1510_v41 = vadd.f32 %v1478_v18, %v1409_v13  ;;  %v975_v48 = vmul.f32 %v2926_v37, %v3067_v33  ;;  %v976_v54 = vmul.f32 %v2926_v37, %v3074_v40  ;;  %3946 = vst [vmem:[#allocation15_spill] sm:$0xff] %v3194_v31 }
 0x1d2   : > { %v840_v2 = vmax.f32 %v742_v50, 0.0  ;;  %v1511_v53 = vadd.f32 %v1479_v26, %v1410_v60  ;;  %v1076_v43 = vmul.f32 %v2935_v46, %v3079_v56  ;;  %v1077_v3 = vmul.f32 %v2935_v46, %v3081_v57  ;;  %v3199_v60 = vld [vmem:[#allocation2 + $0xcf] sm:$0xff] }
 0x1d3   : > { %v839_v55 = vmax.f32 %v737_v38, 0.0  ;;  %v1612_v61 = vadd.f32 %v1580_v0, %v1510_v41  ;;  %v1007_v63 = vadd.f32 %v2932_v45, %v975_v48  ;;  %v1008_v17 = vadd.f32 %v2932_v45, %v976_v54  ;;  %3947 = vst [vmem:[#allocation16_spill] sm:$0xff] %v3199_v60 }
 0x1d4   : > { %v872_v10 = vmin.f32 %v840_v2, 6.0  ;;  %v1613_v16 = vadd.f32 %v1581_v59, %v1511_v53  ;;  %v1177_v33 = vmul.f32 %v2944_v58, %v3088_v4  ;;  %v1178_v56 = vmul.f32 %v2944_v58, %v3094_v15  ;;  %v3204_v2 = vld [vmem:[#allocation2 + $0xc8] sm:$0xff] }
 0x1d5   : > { %v871_v18 = vmin.f32 %v839_v55, 6.0  ;;  %v1713_v23 = vadd.f32 %v1681_v49, %v1612_v61  ;;  %v1108_v40 = vadd.f32 %v1076_v43, %v1007_v63  ;;  %v1109_v25 = vadd.f32 %v1077_v3, %v1008_v17  ;;  %3948 = vst [vmem:[#allocation17_spill] sm:$0xff] %v3204_v2  ;;  %v3208_v55 = vld [vmem:[#allocation2 + $0xd0] sm:$0xff] }
 0x1d6   : > { %906 = vst.msk [vmem:[#allocation2 + $0x110] sm:$0xff] %vm890_vm4, %v872_v10  ;;  %v1714_v24 = vadd.f32 %v1682_v34, %v1613_v16  ;;  %v1278_v57 = vmul.f32 %v2958_v11, %v3132_v5  ;;  %v1279_v26 = vmul.f32 %v2958_v11, %v3134_v7  ;;  %v1379_v59 = vmul.f32 %v2952_v8, %v3138_v19  ;;  %v3210_v61 = vld [vmem:[#allocation2 + $0xc9] sm:$0xff] }
 0x1d7   : > { %905 = vst.msk [vmem:[#allocation2 + $0x108] sm:$0xff] %vm890_vm4, %v871_v18  ;;  %v2436_v30 = vpop.f32.mrb[16].mxu0  ;;  %v1814_v4 = vadd.f32 %v1782_v51, %v1713_v23  ;;  %v1209_v0 = vadd.f32 %v1177_v33, %v1108_v40  ;;  %v1380_v15 = vmul.f32 %v2952_v8, %v3140_v20  ;;  %v1210_v50 = vadd.f32 %v1178_v56, %v1109_v25 }
 0x1d8   : > { %v752_v13 = vadd.f32 %v2436_v30, %v2923_v36  ;;  %v746_v49 = vpop.f32.mrb[17].mxu0  ;;  %v1815_v34 = vadd.f32 %v1783_v42, %v1714_v24  ;;  %v1480_v35 = vmul.f32 %v2955_v9, %v3144_v27  ;;  %v1481_v48 = vmul.f32 %v2955_v9, %v3146_v28  ;;  %3949 = vst [vmem:[#allocation18_spill] sm:$0xff] %v3208_v55 }
 0x1d9   : > { %v747_v51 = vadd.f32 %v2923_v36, %v746_v49  ;;  %v1846_v38 = vmax.f32 %v1814_v4, 0.0  ;;  %v1310_v41 = vadd.f32 %v1278_v57, %v1209_v0  ;;  %v1311_v43 = vadd.f32 %v1279_v26, %v1210_v50  ;;  %3950 = vst [vmem:[#allocation19_spill] sm:$0xff] %v3210_v61  ;;  %v3222_v26 = vld [vmem:[#allocation2 + $0xd1] sm:$0xff] }
 0x1da   : > { %v842_v53 = vmax.f32 %v752_v13, 0.0  ;;  %v1847_v54 = vmax.f32 %v1815_v34, 0.0  ;;  %v1582_v42 = vmul.f32 %v2984_v52, %v3194_v31  ;;  %v1583_v16 = vmul.f32 %v2984_v52, %v3199_v60  ;;  %3951 = vst [vmem:[#allocation20_spill] sm:$0xff] %v3222_v26 }
 0x1db   : > { %v841_v63 = vmax.f32 %v747_v51, 0.0  ;;  %v3212_v3 = vmin.f32 %v1846_v38, 6.0  ;;  %v1411_v10 = vadd.f32 %v1379_v59, %v1310_v41  ;;  %v1412_v18 = vadd.f32 %v1380_v15, %v1311_v43 }
 0x1dc   : > { %v874_v17 = vmin.f32 %v842_v53, 6.0  ;;  %v3216_v33 = vmin.f32 %v1847_v54, 6.0  ;;  %v1683_v23 = vmul.f32 %v2978_v44, %v3204_v2  ;;  %v1684_v57 = vmul.f32 %v2978_v44, %v3208_v55 }
 0x1dd   : > { %v873_v40 = vmin.f32 %v841_v63, 6.0  ;;  %v1048_v56 = vld [vmem:[#allocation2 + $0x110] sm:$0xff]  ;;  %v1512_v25 = vadd.f32 %v1480_v35, %v1411_v10  ;;  %v1784_v30 = vmul.f32 %v2981_v47, %v3210_v61  ;;  %v1513_v34 = vadd.f32 %v1481_v48, %v1412_v18 }
 0x1de   : > { %v1149_v24 = vld [vmem:[#allocation2 + $0x111] sm:$0xff]  ;;  %908 = vst.msk [vmem:[#allocation2 + $0x130] sm:$0xff] %vm890_vm4, %v874_v17  ;;  %v946_v4 = vld [vmem:[#allocation2 + $0x107] sm:$0xff]  ;;  %v1085_v15 = vmul.f32 %v2935_v46, %v1048_v56  ;;  %v1785_v48 = vmul.f32 %v2981_v47, %v3222_v26 }
 0x1df   : > { %v947_v0 = vld [vmem:[#allocation2 + $0x10f] sm:$0xff]  ;;  %v1186_v13 = vmul.f32 %v2944_v58, %v1149_v24  ;;  %907 = vst.msk [vmem:[#allocation2 + $0x128] sm:$0xff] %vm890_vm4, %v873_v40  ;;  %v2439_v50 = vpop.f32.mrb[18].mxu0  ;;  %v983_v35 = vmul.f32 %v2926_v37, %v946_v4  ;;  %v1614_v53 = vadd.f32 %v1582_v42, %v1512_v25  ;;  %v1615_v10 = vadd.f32 %v1583_v16, %v1513_v34 }
 0x1e0   : > { %v1047_v59 = vld [vmem:[#allocation2 + $0x108] sm:$0xff]  ;;  %v984_v51 = vmul.f32 %v2926_v37, %v947_v0  ;;  %v762_v54 = vadd.f32 %v2439_v50, %v2923_v36  ;;  %v756_v43 = vpop.f32.mrb[19].mxu0  ;;  %v977_v42 = vmul.f32 %v2926_v37, %v3132_v5  ;;  %v978_v25 = vmul.f32 %v2926_v37, %v3134_v7 }
 0x1e1   : > { %v1084_v38 = vmul.f32 %v2935_v46, %v1047_v59  ;;  %v1148_v41 = vld [vmem:[#allocation2 + $0x109] sm:$0xff]  ;;  %v757_v17 = vadd.f32 %v2923_v36, %v756_v43  ;;  %v1015_v18 = vadd.f32 %v2932_v45, %v983_v35  ;;  %v1715_v56 = vadd.f32 %v1683_v23, %v1614_v53 }
 0x1e2   : > { %v1185_v63 = vmul.f32 %v2944_v58, %v1148_v41  ;;  %v1016_v40 = vadd.f32 %v2932_v45, %v984_v51  ;;  %v844_v24 = vmax.f32 %v762_v54, 0.0  ;;  %v1716_v4 = vadd.f32 %v1684_v57, %v1615_v10 }
 0x1e3   : > { %v843_v0 = vmax.f32 %v757_v17, 0.0  ;;  %v1116_v16 = vadd.f32 %v1084_v38, %v1015_v18  ;;  %v1816_v34 = vadd.f32 %v1784_v30, %v1715_v56  ;;  %v3247_v43 = vadd.f32 %v2932_v45, %v977_v42 }
 0x1e4   : > { %v1117_v59 = vadd.f32 %v1085_v15, %v1016_v40  ;;  %v876_v50 = vmin.f32 %v844_v24, 6.0  ;;  %v1817_v41 = vadd.f32 %v1785_v48, %v1716_v4  ;;  %v3250_v35 = vadd.f32 %v2932_v45, %v978_v25 }
 0x1e5   : > { %v875_v23 = vmin.f32 %v843_v0, 6.0  ;;  %v1217_v57 = vadd.f32 %v1185_v63, %v1116_v16  ;;  %v1351_v53 = vld [vmem:[#allocation2 + $0x130] sm:$0xff]  ;;  %v1848_v54 = vmax.f32 %v1816_v34, 0.0 }
 0x1e6   : > { %v1218_v51 = vadd.f32 %v1186_v13, %v1117_v59  ;;  %v1452_v5 = vld [vmem:[#allocation2 + $0x131] sm:$0xff]  ;;  %910 = vst.msk [vmem:[#allocation2 + $0x150] sm:$0xff] %vm890_vm4, %v876_v50  ;;  %v1249_v7 = vld [vmem:[#allocation2 + $0x127] sm:$0xff]  ;;  %v1388_v30 = vmul.f32 %v2952_v8, %v1351_v53  ;;  %v1087_v48 = vmul.f32 %v2935_v46, %v1351_v53  ;;  %v1905_v53 = vld [vmem:[%s2841_s16] sm:$0xf] }
 0x1e7   : > { %v1250_v38 = vld [vmem:[#allocation2 + $0x12f] sm:$0xff]  ;;  %v1489_v10 = vmul.f32 %v2955_v9, %v1452_v5  ;;  %v1188_v17 = vmul.f32 %v2944_v58, %v1452_v5  ;;  %909 = vst.msk [vmem:[#allocation2 + $0x148] sm:$0xff] %vm890_vm4, %v875_v23  ;;  %v2442_v13 = vpop.f32.mrb[20].mxu0  ;;  %v1286_v63 = vmul.f32 %v2958_v11, %v1249_v7  ;;  %v985_v24 = vmul.f32 %v2926_v37, %v1249_v7 }
 0x1e8   : > { %v1350_v15 = vld [vmem:[#allocation2 + $0x128] sm:$0xff]  ;;  %v1287_v18 = vmul.f32 %v2958_v11, %v1250_v38  ;;  %v772_v4 = vadd.f32 %v2442_v13, %v2923_v36  ;;  %v766_v42 = vpop.f32.mrb[21].mxu0  ;;  %v986_v0 = vmul.f32 %v2926_v37, %v1250_v38  ;;  %v1849_v13 = vmax.f32 %v1817_v41, 0.0  ;;  %2406 = vmatprep.mubr.msk.f32.mxu1 %vm890_vm4, %v1905_v53 }
 0x1e9   : > { %v1387_v40 = vmul.f32 %v2952_v8, %v1350_v15  ;;  %v1451_v56 = vld [vmem:[#allocation2 + $0x129] sm:$0xff]  ;;  %v1086_v16 = vmul.f32 %v2935_v46, %v1350_v15  ;;  %v767_v59 = vadd.f32 %v2923_v36, %v766_v42  ;;  %v1318_v34 = vadd.f32 %v1286_v63, %v1217_v57 }
 0x1ea   : > { %v1488_v25 = vmul.f32 %v2955_v9, %v1451_v56  ;;  %v1319_v50 = vadd.f32 %v1287_v18, %v1218_v51  ;;  %v1017_v23 = vadd.f32 %v2932_v45, %v985_v24  ;;  %v846_v5 = vmax.f32 %v772_v4, 0.0 }
 0x1eb   : > { %v1018_v49 = vadd.f32 %v2932_v45, %v986_v0  ;;  %v1187_v7 = vmul.f32 %v2944_v58, %v1451_v56  ;;  %v845_v39 = vmax.f32 %v767_v59, 0.0  ;;  %v1419_v22 = vadd.f32 %v1387_v40, %v1318_v34 }
 0x1ec   : > { %v1420_v38 = vadd.f32 %v1388_v30, %v1319_v50  ;;  %v1118_v21 = vadd.f32 %v1086_v16, %v1017_v23  ;;  %v878_v15 = vmin.f32 %v846_v5, 6.0  ;;  %v3272_v42 = vmin.f32 %v1848_v54, 6.0 }
 0x1ed   : > { %v1119_v1 = vadd.f32 %v1087_v48, %v1018_v49  ;;  %v3274_v57 = vmin.f32 %v1849_v13, 6.0  ;;  %v877_v51 = vmin.f32 %v845_v39, 6.0  ;;  %v1520_v63 = vadd.f32 %v1488_v25, %v1419_v22  ;;  %v3276_v24 = vld [vmem:[#allocation2 + $0x150] sm:$0xff] }
 0x1ee   : > { %v1521_v18 = vadd.f32 %v1489_v10, %v1420_v38  ;;  %v3278_v4 = vld [vmem:[#allocation2 + $0x151] sm:$0xff]  ;;  %v1219_v41 = vadd.f32 %v1187_v7, %v1118_v21  ;;  %912 = vst.msk [vmem:[#allocation2 + $0x170] sm:$0xff] %vm890_vm4, %v878_v15  ;;  %v1553_v56 = vld [vmem:[#allocation2 + $0x147] sm:$0xff]  ;;  %v1692_v49 = vmul.f32 %v2978_v44, %v3276_v24  ;;  %v1390_v22 = vmul.f32 %v2952_v8, %v3276_v24 }
 0x1ef   : > { %v1554_v40 = vld [vmem:[#allocation2 + $0x14f] sm:$0xff]  ;;  %v1793_v54 = vmul.f32 %v2981_v47, %v3278_v4  ;;  %v1220_v39 = vadd.f32 %v1188_v17, %v1119_v1  ;;  %911 = vst.msk [vmem:[#allocation2 + $0x168] sm:$0xff] %vm890_vm4, %v877_v51  ;;  %v2445_v10 = vpop.f32.mrb[22].mxu0  ;;  %v1590_v21 = vmul.f32 %v2984_v52, %v1553_v56  ;;  %v1288_v16 = vmul.f32 %v2958_v11, %v1553_v56 }
 0x1f0   : > { %v3281_v30 = vld [vmem:[#allocation2 + $0x148] sm:$0xff]  ;;  %v1591_v48 = vmul.f32 %v2984_v52, %v1554_v40  ;;  %v782_v59 = vadd.f32 %v2445_v10, %v2923_v36  ;;  %v776_v34 = vpop.f32.mrb[23].mxu0  ;;  %v1289_v17 = vmul.f32 %v2958_v11, %v1554_v40  ;;  %v1491_v51 = vmul.f32 %v2955_v9, %v3278_v4 }
 0x1f1   : > { %v1691_v25 = vmul.f32 %v2978_v44, %v3281_v30  ;;  %v1755_v0 = vld [vmem:[#allocation2 + $0x149] sm:$0xff]  ;;  %v1389_v50 = vmul.f32 %v2952_v8, %v3281_v30  ;;  %v777_v23 = vadd.f32 %v2923_v36, %v776_v34  ;;  %v1622_v53 = vadd.f32 %v1590_v21, %v1520_v63 }
 0x1f2   : > { %v1792_v1 = vmul.f32 %v2981_v47, %v1755_v0  ;;  %v1623_v5 = vadd.f32 %v1591_v48, %v1521_v18  ;;  %v1320_v7 = vadd.f32 %v1288_v16, %v1219_v41  ;;  %v848_v13 = vmax.f32 %v782_v59, 0.0 }
 0x1f3   : > { %v1321_v38 = vadd.f32 %v1289_v17, %v1220_v39  ;;  %v1490_v15 = vmul.f32 %v2955_v9, %v1755_v0  ;;  %v847_v10 = vmax.f32 %v777_v23, 0.0  ;;  %v1723_v26 = vadd.f32 %v1691_v25, %v1622_v53 }
 0x1f4   : > { %v1724_v61 = vadd.f32 %v1692_v49, %v1623_v5  ;;  %v1421_v55 = vadd.f32 %v1389_v50, %v1320_v7  ;;  %v880_v2 = vmin.f32 %v848_v13, 6.0  ;;  %v987_v31 = vmul.f32 %v2926_v37, %v1553_v56 }
 0x1f5   : > { %v1422_v60 = vadd.f32 %v1390_v22, %v1321_v38  ;;  %v988_v34 = vmul.f32 %v2926_v37, %v1554_v40  ;;  %v879_v63 = vmin.f32 %v847_v10, 6.0  ;;  %v1824_v18 = vadd.f32 %v1792_v1, %v1723_v26  ;;  %v3306_v39 = vld [vmem:[#allocation2 + $0x170] sm:$0xff] }
 0x1f6   : > { %v1825_v41 = vadd.f32 %v1793_v54, %v1724_v61  ;;  %v1522_v21 = vadd.f32 %v1490_v15, %v1421_v55  ;;  %v3308_v48 = vld [vmem:[#allocation2 + $0x171] sm:$0xff]  ;;  %914 = vst.msk [vmem:[#allocation2 + $0x190] sm:$0xff] %vm890_vm4, %v880_v2  ;;  %v3311_v25 = vld [vmem:[#allocation2 + $0x167] sm:$0xff]  ;;  %v1694_v37 = vmul.f32 %v2978_v44, %v3306_v39  ;;  %v1019_v55 = vadd.f32 %v2932_v45, %v987_v31 }
 0x1f7   : > { %v1523_v16 = vadd.f32 %v1491_v51, %v1422_v60  ;;  %v3313_v49 = vld [vmem:[#allocation2 + $0x16f] sm:$0xff]  ;;  %v1795_v61 = vmul.f32 %v2981_v47, %v3308_v48  ;;  %913 = vst.msk [vmem:[#allocation2 + $0x188] sm:$0xff] %vm890_vm4, %v879_v63  ;;  %v2448_v26 = vpop.f32.mrb[24].mxu0  ;;  %v1856_v56 = vmax.f32 %v1824_v18, 0.0  ;;  %v1592_v60 = vmul.f32 %v2984_v52, %v3311_v25 }
 0x1f8   : > { %v3315_v22 = vld [vmem:[#allocation2 + $0x168] sm:$0xff]  ;;  %v1857_v2 = vmax.f32 %v1825_v41, 0.0  ;;  %v1593_v40 = vmul.f32 %v2984_v52, %v3313_v49  ;;  %v792_v59 = vadd.f32 %v2448_v26, %v2923_v36  ;;  %v786_v1 = vpop.f32.mrb[25].mxu0  ;;  %v1020_v50 = vadd.f32 %v2932_v45, %v988_v34 }
 0x1f9   : > { %v3327_v54 = vld [vmem:[#allocation2 + $0x169] sm:$0xff]  ;;  %v1693_v17 = vmul.f32 %v2978_v44, %v3315_v22  ;;  %v787_v23 = vadd.f32 %v2923_v36, %v786_v1  ;;  %v1888_v53 = vmin.f32 %v1856_v56, 6.0  ;;  %v1624_v7 = vadd.f32 %v1592_v60, %v1522_v21 }
 0x1fa   : > { %v1794_v31 = vmul.f32 %v2981_v47, %v3327_v54  ;;  %v1889_v5 = vmin.f32 %v1857_v2, 6.0  ;;  %v850_v13 = vmax.f32 %v792_v59, 0.0  ;;  %v1625_v15 = vadd.f32 %v1593_v40, %v1523_v16  ;;  %v3373_v59 = vld [vmem:[%s2826_s18] ss:$0 sm:$0xff] }
 0x1fb   : > { %v1088_v51 = vmul.f32 %v2935_v46, %v3281_v30  ;;  %v1089_v10 = vmul.f32 %v2935_v46, %v3276_v24  ;;  %v849_v45 = vmax.f32 %v787_v23, 0.0  ;;  %v1725_v36 = vadd.f32 %v1693_v17, %v1624_v7 }
 0x1fc   : > { %v2458_v34 = vpack.c.bf16 %v1889_v5, %v1888_v53  ;;  %v1189_v63 = vmul.f32 %v2944_v58, %v1755_v0  ;;  %v882_v18 = vmin.f32 %v850_v13, 6.0  ;;  %v1726_v41 = vadd.f32 %v1694_v37, %v1625_v15 }
 0x1fd   : > { %v1120_v21 = vadd.f32 %v1088_v51, %v1019_v55  ;;  %v1121_v26 = vadd.f32 %v1089_v10, %v1020_v50  ;;  %v881_v56 = vmin.f32 %v849_v45, 6.0  ;;  %v1826_v16 = vadd.f32 %v1794_v31, %v1725_v36  ;;  %v3380_v53 = vld [vmem:[#allocation2 + $0x190] sm:$0xff] }
 0x1fe   : > { %2460 = vmatprep.subr.msk.bf16.mxu1 %vm3338_vm5, %v2458_v34  ;;  %v1190_v30 = vmul.f32 %v2944_v58, %v3278_v4  ;;  %v1290_v46 = vmul.f32 %v2958_v11, %v3311_v25  ;;  %916 = vst.msk [vmem:[#allocation2 + $0x1b0] sm:$0xff] %vm890_vm4, %v882_v18  ;;  %v3954_v24 = vpack.c.bf16 %v3049_v14, %v3047_v12  ;;  %v3363_v4 = vld [vmem:[#allocation2 + $0x187] sm:$0xff]  ;;  %v3389_v34 = vld [vmem:[#allocation2 + $0x191] sm:$0xff]  ;;  %v2693_v38 = vmov (!%p2332_p1), 839922192  }
 0x1ff   : > { %v1827_v0 = vadd.f32 %v1795_v61, %v1726_v41  ;;  %v1221_v37 = vadd.f32 %v1189_v63, %v1120_v21  ;;  %v1291_v55 = vmul.f32 %v2958_v11, %v3313_v49  ;;  %v1391_v58 = vmul.f32 %v2952_v8, %v3315_v22  ;;  %915 = vst.msk [vmem:[#allocation2 + $0x1a8] sm:$0xff] %vm890_vm4, %v881_v56  ;;  %v2451_v2 = vpop.f32.mrb[26].mxu0  ;;  %v3370_v61 = vld [vmem:[#allocation2 + $0x18f] sm:$0xff] }
 0x200   : > { %2463 = vmatpush3.bf16.xpose.msk.msra.mxu1 %vm3338_vm5, %v3954_v24  ;;  %v1858_v60 = vmax.f32 %v1826_v16, 0.0  ;;  %v1222_v40 = vadd.f32 %v1190_v30, %v1121_v26  ;;  %v1392_v12 = vmul.f32 %v2952_v8, %v3306_v39  ;;  %v1492_v14 = vmul.f32 %v2955_v9, %v3327_v54  ;;  %v796_v1 = vpop.f32.mrb[27].mxu0  ;;  %v3378_v23 = vld [vmem:[#allocation2 + $0x188] sm:$0xff]  ;;  %v3400_v24 = vld [vmem:[%s2836_s9] ss:$0 sm:$0xff] }
 0x201   : > { %v802_v11 = vadd.f32 %v3373_v59, %v2451_v2  ;;  %v1859_v17 = vmax.f32 %v1827_v0, 0.0  ;;  %v1322_v31 = vadd.f32 %v1290_v46, %v1221_v37  ;;  %v1493_v50 = vmul.f32 %v2955_v9, %v3308_v48  ;;  %v3385_v15 = vld [vmem:[#allocation2 + $0x189] sm:$0xff] }
 0x202   : > { %v797_v8 = vadd.f32 %v3373_v59, %v796_v1  ;;  %v1890_v5 = vmin.f32 %v1858_v60, 6.0  ;;  %v1323_v7 = vadd.f32 %v1291_v55, %v1222_v40  ;;  %v1594_v13 = vmul.f32 %v2984_v52, %v3363_v4  ;;  %v3410_v55 = vld [vmem:[%s2836_s9 + $0x1] ss:$0 sm:$0xff]  ;;  %v3436_v1 = vld [vmem:[%s2836_s9 + $0x3] ss:$0 sm:$0xff] }
 0x203   : > { %v852_v51 = vmax.f32 %v802_v11, 0.0  ;;  %v1891_v10 = vmin.f32 %v1859_v17, 6.0  ;;  %v1423_v45 = vadd.f32 %v1391_v58, %v1322_v31  ;;  %v1595_v9 = vmul.f32 %v2984_v52, %v3370_v61 }
 0x204   : > { %v851_v36 = vmax.f32 %v797_v8, 0.0  ;;  %v1424_v63 = vadd.f32 %v1392_v12, %v1323_v7  ;;  %v1695_v18 = vmul.f32 %v2978_v44, %v3378_v23  ;;  %v1696_v41 = vmul.f32 %v2978_v44, %v3380_v53  ;;  %v3427_v12 = vld [vmem:[%s2836_s9 + $0x2] ss:$0 sm:$0xff] }
 0x205   : > { %v884_v21 = vmin.f32 %v852_v51, 6.0  ;;  %v2464_v26 = vpack.c.bf16 %v1891_v10, %v1890_v5  ;;  %v1524_v56 = vadd.f32 %v1492_v14, %v1423_v45  ;;  %v1796_v16 = vmul.f32 %v2981_v47, %v3385_v15 }
 0x206   : > { %v883_v30 = vmin.f32 %v851_v36, 6.0  ;;  %v1525_v52 = vadd.f32 %v1493_v50, %v1424_v63  ;;  %v1797_v46 = vmul.f32 %v2981_v47, %v3389_v34  ;;  %v989_v0 = vmul.f32 %v3400_v24, %v3311_v25  ;;  %v3450_v63 = vld [vmem:[#allocation2 + $0x1a7] sm:$0xff] }
 0x207   : > { %918 = vst.msk [vmem:[#allocation2 + $0x1d0] sm:$0xff] %vm890_vm4, %v884_v21  ;;  %2466 = vmatprep.subr.msk.bf16.mxu1 %vm3338_vm5, %v2464_v26  ;;  %v1626_v44 = vadd.f32 %v1594_v13, %v1524_v56  ;;  %v990_v37 = vmul.f32 %v3400_v24, %v3313_v49  ;;  %v1090_v47 = vmul.f32 %v3410_v55, %v3315_v22  ;;  %v2454_v2 = vpop.f32.mrb[28].mxu0  ;;  %v3423_v49 = vld [vmem:[%s2831_s20] ss:$0 sm:$0xff]  ;;  %v3444_v13 = vld [vmem:[%s2836_s9 + $0x4] ss:$0 sm:$0xff] }
 0x208   : > { %v1091_v58 = vmul.f32 %v3410_v55, %v3306_v39  ;;  %917 = vst.msk [vmem:[#allocation2 + $0x1c8] sm:$0xff] %vm890_vm4, %v883_v30  ;;  %v3955_v25 = vpack.c.bf16 %v3090_v6, %v3084_v62  ;;  %v1627_v60 = vadd.f32 %v1595_v9, %v1525_v52  ;;  %v1021_v40 = vadd.f32 %v3423_v49, %v989_v0  ;;  %v806_v6 = vpop.f32.mrb[29].mxu0  ;;  %v3455_v56 = vld [vmem:[%s2836_s9 + $0x5] ss:$0 sm:$0xff]  ;;  %v3459_v30 = vld [vmem:[#allocation2 + $0x1a8] sm:$0xff]  ;;  %v3461_v52 = vld [vmem:[#allocation2 + $0x1b0] sm:$0xff] }
 0x209   : > { %v1191_v39 = vmul.f32 %v3427_v12, %v3327_v54  ;;  %v1192_v22 = vmul.f32 %v3427_v12, %v3308_v48  ;;  %v812_v62 = vadd.f32 %v3373_v59, %v2454_v2  ;;  %v1727_v14 = vadd.f32 %v1695_v18, %v1626_v44  ;;  %v3452_v18 = vld [vmem:[#allocation2 + $0x1af] sm:$0xff] }
 0x20a   : > { %2469 = vmatpush3.bf16.xpose.msk.msra.mxu1 %vm3338_vm5, %v3955_v25  ;;  %v1022_v11 = vadd.f32 %v3423_v49, %v990_v37  ;;  %v1292_v17 = vmul.f32 %v3436_v1, %v3363_v4  ;;  %v807_v31 = vadd.f32 %v3373_v59, %v806_v6  ;;  %v1728_v50 = vadd.f32 %v1696_v41, %v1627_v60  ;;  %v3471_v60 = vld [vmem:[%s2836_s9 + $0x6] ss:$0 sm:$0xff] }
 0x20b   : > { %v1122_v8 = vadd.f32 %v1090_v47, %v1021_v40  ;;  %v1293_v54 = vmul.f32 %v3436_v1, %v3370_v61  ;;  %v854_v48 = vmax.f32 %v812_v62, 0.0  ;;  %v1828_v5 = vadd.f32 %v1796_v16, %v1727_v14  ;;  %v3465_v47 = vld [vmem:[#allocation2 + $0x1a9] sm:$0xff]  ;;  %v3479_v14 = vld [vmem:[%s2836_s9 + $0x7] ss:$0 sm:$0xff] }
 0x20c   : > { %v1123_v7 = vadd.f32 %v1091_v58, %v1022_v11  ;;  %v1393_v51 = vmul.f32 %v3444_v13, %v3378_v23  ;;  %v853_v10 = vmax.f32 %v807_v31, 0.0  ;;  %v1829_v45 = vadd.f32 %v1797_v46, %v1728_v50  ;;  %v3467_v58 = vld [vmem:[#allocation2 + $0x1b1] sm:$0xff] }
 0x20d   : > { %v1223_v9 = vadd.f32 %v1191_v39, %v1122_v8  ;;  %v1394_v36 = vmul.f32 %v3444_v13, %v3380_v53  ;;  %v886_v41 = vmin.f32 %v854_v48, 6.0  ;;  %v1860_v21 = vmax.f32 %v1828_v5, 0.0 }
 0x20e   : > { %v1224_v26 = vadd.f32 %v1192_v22, %v1123_v7  ;;  %v1494_v16 = vmul.f32 %v3455_v56, %v3385_v15  ;;  %v885_v46 = vmin.f32 %v853_v10, 6.0  ;;  %v1861_v0 = vmax.f32 %v1829_v45, 0.0 }
 0x20f   : > { %v1324_v44 = vadd.f32 %v1292_v17, %v1223_v9  ;;  %v1495_v37 = vmul.f32 %v3455_v56, %v3389_v34  ;;  %920 = vst.msk [vmem:[#allocation2 + $0x1f0] sm:$0xff] %vm890_vm4, %v886_v41  ;;  %v1892_v25 = vmin.f32 %v1860_v21, 6.0  ;;  %v1596_v40 = vmul.f32 %v3471_v60, %v3450_v63  ;;  %v2457_v62 = vpop.f32.mrb[30].mxu0 }
 0x210   : > { %v1325_v2 = vadd.f32 %v1293_v54, %v1224_v26  ;;  %v1597_v39 = vmul.f32 %v3471_v60, %v3452_v18  ;;  %919 = vst.msk [vmem:[#allocation2 + $0x1e8] sm:$0xff] %vm890_vm4, %v885_v46  ;;  %v1893_v22 = vmin.f32 %v1861_v0, 6.0  ;;  %v1697_v11 = vmul.f32 %v3479_v14, %v3459_v30  ;;  %v816_v50 = vpop.f32.mrb[31].mxu0  ;;  %v3487_v54 = vld [vmem:[%s2836_s9 + $0x8] ss:$0 sm:$0xff] }
 0x211   : > { %v1425_v6 = vadd.f32 %v1393_v51, %v1324_v44  ;;  %v1698_v17 = vmul.f32 %v3479_v14, %v3461_v52  ;;  %v822_v31 = vadd.f32 %v3373_v59, %v2457_v62  ;;  %v1798_v48 = vmul.f32 %v3487_v54, %v3465_v47  ;;  %v3522_v62 = vld [vmem:[#allocation2 + $0x1cf] sm:$0xff] }
 0x212   : > { %v1426_v8 = vadd.f32 %v1394_v36, %v1325_v2  ;;  %v1799_v5 = vmul.f32 %v3487_v54, %v3467_v58  ;;  %v2470_v7 = vpack.c.bf16 %v1893_v22, %v1892_v25  ;;  %v817_v51 = vadd.f32 %v3373_v59, %v816_v50  ;;  %v3520_v22 = vld [vmem:[#allocation2 + $0x1c7] sm:$0xff] }
 0x213   : > { %v1526_v10 = vadd.f32 %v1494_v16, %v1425_v6  ;;  %v991_v45 = vmul.f32 %v3400_v24, %v3363_v4  ;;  %v856_v9 = vmax.f32 %v822_v31, 0.0  ;;  %v992_v36 = vmul.f32 %v3400_v24, %v3370_v61  ;;  %v3531_v31 = vld [vmem:[#allocation2 + $0x1d0] sm:$0xff] }
 0x214   : > { %v1527_v41 = vadd.f32 %v1495_v37, %v1426_v8  ;;  %v1092_v21 = vmul.f32 %v3410_v55, %v3378_v23  ;;  %2472 = vmatprep.subr.msk.bf16.mxu1 %vm3338_vm5, %v2470_v7  ;;  %v855_v26 = vmax.f32 %v817_v51, 0.0  ;;  %v1093_v59 = vmul.f32 %v3410_v55, %v3380_v53 }
 0x215   : > { %v1628_v46 = vadd.f32 %v1596_v40, %v1526_v10  ;;  %v1023_v0 = vadd.f32 %v3423_v49, %v991_v45  ;;  %v3956_v4 = vpack.c.bf16 %v3156_v32, %v3149_v29  ;;  %v888_v61 = vmin.f32 %v856_v9, 6.0  ;;  %v3539_v10 = vld [vmem:[#allocation2 + $0x1d1] sm:$0xff] }
 0x216   : > { %v1629_v16 = vadd.f32 %v1597_v39, %v1527_v41  ;;  %v1024_v23 = vadd.f32 %v3423_v49, %v992_v36  ;;  %v1193_v44 = vmul.f32 %v3427_v12, %v3385_v15  ;;  %v887_v37 = vmin.f32 %v855_v26, 6.0 }
 0x217   : > { %2475 = vmatpush3.bf16.xpose.msk.msra.mxu1 %vm3338_vm5, %v3956_v4  ;;  %v1729_v25 = vadd.f32 %v1697_v11, %v1628_v46  ;;  %v1124_v2 = vadd.f32 %v1092_v21, %v1023_v0  ;;  %v1194_v40 = vmul.f32 %v3427_v12, %v3389_v34  ;;  %922 = vst.msk [vmem:[#allocation2 + $0x210] sm:$0xff] %vm890_vm4, %v888_v61 }
 0x218   : > { %v1730_v53 = vadd.f32 %v1698_v17, %v1629_v16  ;;  %v1125_v29 = vadd.f32 %v1093_v59, %v1024_v23  ;;  %v1294_v32 = vmul.f32 %v3436_v1, %v3450_v63  ;;  %v1295_v39 = vmul.f32 %v3436_v1, %v3452_v18  ;;  %921 = vst.msk [vmem:[#allocation2 + $0x208] sm:$0xff] %vm890_vm4, %v887_v37  ;;  %v3529_v17 = vld [vmem:[#allocation2 + $0x1c8] sm:$0xff] }
 0x219   : > { %v1830_v15 = vadd.f32 %v1798_v48, %v1729_v25  ;;  %v1225_v6 = vadd.f32 %v1193_v44, %v1124_v2  ;;  %v1395_v34 = vmul.f32 %v3444_v13, %v3459_v30  ;;  %v1396_v11 = vmul.f32 %v3444_v13, %v3461_v52  ;;  %v3537_v48 = vld [vmem:[#allocation2 + $0x1c9] sm:$0xff] }
 0x21a   : > { %v1831_v50 = vadd.f32 %v1799_v5, %v1730_v53  ;;  %v1226_v8 = vadd.f32 %v1194_v40, %v1125_v29  ;;  %v1496_v7 = vmul.f32 %v3455_v56, %v3465_v47  ;;  %v1497_v51 = vmul.f32 %v3455_v56, %v3467_v58 }
 0x21b   : > { %v1862_v45 = vmax.f32 %v1830_v15, 0.0  ;;  %v1326_v9 = vadd.f32 %v1294_v32, %v1225_v6  ;;  %v1598_v41 = vmul.f32 %v3471_v60, %v3520_v22  ;;  %v1599_v36 = vmul.f32 %v3471_v60, %v3522_v62 }
 0x21c   : > { %v1863_v5 = vmax.f32 %v1831_v50, 0.0  ;;  %v1327_v21 = vadd.f32 %v1295_v39, %v1226_v8  ;;  %v1699_v26 = vmul.f32 %v3479_v14, %v3529_v17  ;;  %v1700_v46 = vmul.f32 %v3479_v14, %v3531_v31  ;;  %v3579_v8 = vld [vmem:[#allocation2 + $0x1ef] sm:$0xff] }
 0x21d   : > { %v1894_v0 = vmin.f32 %v1862_v45, 6.0  ;;  %v1427_v59 = vadd.f32 %v1395_v34, %v1326_v9  ;;  %v1800_v4 = vmul.f32 %v3487_v54, %v3537_v48  ;;  %v1801_v61 = vmul.f32 %v3487_v54, %v3539_v10 }
 0x21e   : > { %v1895_v16 = vmin.f32 %v1863_v5, 6.0  ;;  %v1428_v23 = vadd.f32 %v1396_v11, %v1327_v21  ;;  %v2485_v44 = vpack.c.bf16 %v3274_v57, %v3272_v42  ;;  %v993_v37 = vmul.f32 %v3400_v24, %v3450_v63  ;;  %v3594_v5 = vld [vmem:[#allocation2 + $0x1e9] sm:$0xff] }
 0x21f   : > { %v1528_v25 = vadd.f32 %v1496_v7, %v1427_v59  ;;  %v994_v2 = vmul.f32 %v3400_v24, %v3452_v18  ;;  %v1094_v40 = vmul.f32 %v3410_v55, %v3459_v30  ;;  %v1095_v53 = vmul.f32 %v3410_v55, %v3461_v52  ;;  %v3571_v30 = vld [vmem:[#allocation2 + $0x1e7] sm:$0xff] }
 0x220   : > { %v2476_v29 = vpack.c.bf16 %v1895_v16, %v1894_v0  ;;  %v1529_v32 = vadd.f32 %v1497_v51, %v1428_v23  ;;  %v1025_v39 = vadd.f32 %v3423_v49, %v993_v37  ;;  %v1195_v15 = vmul.f32 %v3427_v12, %v3465_v47  ;;  %v3581_v7 = vld [vmem:[#allocation2 + $0x1e8] sm:$0xff] }
 0x221   : > { %v1630_v6 = vadd.f32 %v1598_v41, %v1528_v25  ;;  %v1026_v63 = vadd.f32 %v3423_v49, %v994_v2  ;;  %v1196_v34 = vmul.f32 %v3427_v12, %v3467_v58  ;;  %v1296_v18 = vmul.f32 %v3436_v1, %v3520_v22 }
 0x222   : > { %2478 = vmatprep.subr.msk.bf16.mxu1 %vm3338_vm5, %v2476_v29  ;;  %v1631_v52 = vadd.f32 %v1599_v36, %v1529_v32  ;;  %v1126_v11 = vadd.f32 %v1094_v40, %v1025_v39  ;;  %v1297_v50 = vmul.f32 %v3436_v1, %v3522_v62  ;;  %v1397_v47 = vmul.f32 %v3444_v13, %v3529_v17  ;;  %v3592_v36 = vld [vmem:[#allocation2 + $0x1f0] sm:$0xff] }
 0x223   : > { %v3957_v58 = vpack.c.bf16 %v3216_v33, %v3212_v3  ;;  %v1731_v51 = vadd.f32 %v1699_v26, %v1630_v6  ;;  %v1127_v45 = vadd.f32 %v1095_v53, %v1026_v63  ;;  %v1398_v9 = vmul.f32 %v3444_v13, %v3531_v31  ;;  %v3600_v26 = vld [vmem:[#allocation2 + $0x1f1] sm:$0xff] }
 0x224   : > { %v1498_v41 = vmul.f32 %v3455_v56, %v3537_v48  ;;  %v1732_v21 = vadd.f32 %v1700_v46, %v1631_v52  ;;  %v1227_v0 = vadd.f32 %v1195_v15, %v1126_v11  ;;  %v1499_v3 = vmul.f32 %v3455_v56, %v3539_v10 }
 0x225   : > { %2481 = vmatpush3.bf16.xpose.msk.msra.mxu1 %vm3338_vm5, %v3957_v58  ;;  %v1600_v33 = vmul.f32 %v3471_v60, %v3571_v30  ;;  %v1832_v59 = vadd.f32 %v1800_v4, %v1731_v51  ;;  %v1228_v16 = vadd.f32 %v1196_v34, %v1127_v45  ;;  %v1601_v23 = vmul.f32 %v3471_v60, %v3579_v8 }
 0x226   : > { %v1701_v37 = vmul.f32 %v3479_v14, %v3581_v7  ;;  %v1833_v25 = vadd.f32 %v1801_v61, %v1732_v21  ;;  %v1328_v2 = vadd.f32 %v1296_v18, %v1227_v0  ;;  %v1702_v46 = vmul.f32 %v3479_v14, %v3592_v36  ;;  %v3628_v0 = vld [vmem:[#allocation2 + $0xe7] sm:$0xff] }
 0x227   : > { %v1802_v40 = vmul.f32 %v3487_v54, %v3594_v5  ;;  %v1864_v53 = vmax.f32 %v1832_v59, 0.0  ;;  %v1329_v29 = vadd.f32 %v1297_v50, %v1228_v16  ;;  %v1803_v4 = vmul.f32 %v3487_v54, %v3600_v26  ;;  %v3961_v16 = vld [vmem:[#allocation18_spill] sm:$0xff] }
 0x228   : > { %v1078_v32 = vmul.f32 %v3410_v55, %v3138_v19  ;;  %v1865_v39 = vmax.f32 %v1833_v25, 0.0  ;;  %v1429_v15 = vadd.f32 %v1397_v47, %v1328_v2  ;;  %v1079_v61 = vmul.f32 %v3410_v55, %v3140_v20  ;;  %v3958_v19 = vld [vmem:[#allocation15_spill] sm:$0xff]  ;;  %v3959_v20 = vld [vmem:[#allocation16_spill] sm:$0xff] }
 0x229   : > { %v1179_v6 = vmul.f32 %v3427_v12, %v3144_v27  ;;  %v1896_v63 = vmin.f32 %v1864_v53, 6.0  ;;  %v1430_v34 = vadd.f32 %v1398_v9, %v1329_v29  ;;  %v1180_v52 = vmul.f32 %v3427_v12, %v3146_v28  ;;  %v3960_v27 = vld [vmem:[#allocation17_spill] sm:$0xff]  ;;  %v3634_v25 = vld [vmem:[#allocation2 + $0xe8] sm:$0xff]  ;;  %v3962_v29 = vld [vmem:[#allocation19_spill] sm:$0xff] }
 0x22a   : > { %v1110_v18 = vadd.f32 %v1078_v32, %v3247_v43  ;;  %v1897_v11 = vmin.f32 %v1865_v39, 6.0  ;;  %v1530_v50 = vadd.f32 %v1498_v41, %v1429_v15  ;;  %v1111_v58 = vadd.f32 %v1079_v61, %v3250_v35  ;;  %v3630_v43 = vld [vmem:[#allocation2 + $0xef] sm:$0xff] }
 0x22b   : > { %v1280_v47 = vmul.f32 %v3436_v1, %v3958_v19  ;;  %v1531_v51 = vadd.f32 %v1499_v3, %v1430_v34  ;;  %v1281_v21 = vmul.f32 %v3436_v1, %v3959_v20  ;;  %v1381_v9 = vmul.f32 %v3444_v13, %v3960_v27  ;;  %v3636_v3 = vld [vmem:[#allocation2 + $0xf0] sm:$0xff]  ;;  %v3963_v39 = vld [vmem:[#allocation20_spill] sm:$0xff] }
 0x22c   : > { %v1211_v45 = vadd.f32 %v1179_v6, %v1110_v18  ;;  %v2482_v28 = vpack.c.bf16 %v1897_v11, %v1896_v63  ;;  %v1632_v59 = vadd.f32 %v1600_v33, %v1530_v50  ;;  %v1212_v41 = vadd.f32 %v1180_v52, %v1111_v58  ;;  %v3642_v61 = vld [vmem:[#allocation2 + $0xe9] sm:$0xff]  ;;  %v3644_v6 = vld [vmem:[#allocation2 + $0xf1] sm:$0xff] }
 0x22d   : > { %v1382_v35 = vmul.f32 %v3444_v13, %v3961_v16  ;;  %v1633_v2 = vadd.f32 %v1601_v23, %v1531_v51  ;;  %v1482_v32 = vmul.f32 %v3455_v56, %v3962_v29  ;;  %v1483_v15 = vmul.f32 %v3455_v56, %v3963_v39 }
 0x22e   : > { %v1312_v53 = vadd.f32 %v1280_v47, %v1211_v45  ;;  %2484 = vmatprep.subr.msk.bf16.mxu1 %vm3338_vm5, %v2482_v28  ;;  %v1733_v33 = vadd.f32 %v1701_v37, %v1632_v59  ;;  %v1313_v63 = vadd.f32 %v1281_v21, %v1212_v41  ;;  %v1584_v34 = vmul.f32 %v3471_v60, %v3628_v0 }
 0x22f   : > { %v1585_v23 = vmul.f32 %v3471_v60, %v3630_v43  ;;  %2487 = vmatpush3.bf16.xpose.msk.msra.mxu1 %vm3338_vm5, %v2485_v44  ;;  %v1734_v18 = vadd.f32 %v1702_v46, %v1633_v2  ;;  %v1685_v11 = vmul.f32 %v3479_v14, %v3634_v25  ;;  %v1686_v37 = vmul.f32 %v3479_v14, %v3636_v3 }
 0x230   : > { %v1413_v52 = vadd.f32 %v1381_v9, %v1312_v53  ;;  %v1834_v50 = vadd.f32 %v1802_v40, %v1733_v33  ;;  %v1414_v58 = vadd.f32 %v1382_v35, %v1313_v63  ;;  %v1786_v47 = vmul.f32 %v3487_v54, %v3642_v61 }
 0x231   : > { %v1787_v51 = vmul.f32 %v3487_v54, %v3644_v6  ;;  %v1835_v42 = vadd.f32 %v1803_v4, %v1734_v18  ;;  %v995_v44 = vmul.f32 %v3400_v24, %v3520_v22  ;;  %v996_v46 = vmul.f32 %v3400_v24, %v3522_v62 }
 0x232   : > { %v1514_v57 = vadd.f32 %v1482_v32, %v1413_v52  ;;  %v1866_v45 = vmax.f32 %v1834_v50, 0.0  ;;  %v1515_v21 = vadd.f32 %v1483_v15, %v1414_v58  ;;  %v1096_v40 = vmul.f32 %v3410_v55, %v3529_v17  ;;  %v3687_v50 = vld [vmem:[#allocation2 + $0x20f] sm:$0xff] }
 0x233   : > { %v1097_v9 = vmul.f32 %v3410_v55, %v3531_v31  ;;  %v1867_v28 = vmax.f32 %v1835_v42, 0.0  ;;  %v1027_v41 = vadd.f32 %v3423_v49, %v995_v44  ;;  %v1028_v4 = vadd.f32 %v3423_v49, %v996_v46  ;;  %v3699_v46 = vld [vmem:[#allocation2 + $0x209] sm:$0xff] }
 0x234   : > { %v1616_v59 = vadd.f32 %v1584_v34, %v1514_v57  ;;  %v1898_v35 = vmin.f32 %v1866_v45, 6.0  ;;  %v1617_v2 = vadd.f32 %v1585_v23, %v1515_v21  ;;  %v1197_v22 = vmul.f32 %v3427_v12, %v3537_v48  ;;  %v3685_v23 = vld [vmem:[#allocation2 + $0x207] sm:$0xff] }
 0x235   : > { %v1198_v62 = vmul.f32 %v3427_v12, %v3539_v10  ;;  %v1899_v53 = vmin.f32 %v1867_v28, 6.0  ;;  %v1128_v17 = vadd.f32 %v1096_v40, %v1027_v41  ;;  %v1129_v15 = vadd.f32 %v1097_v9, %v1028_v4  ;;  %v3705_v40 = vld [vmem:[#allocation2 + $0x211] sm:$0xff] }
 0x236   : > { %v1717_v32 = vadd.f32 %v1685_v11, %v1616_v59  ;;  %v1718_v33 = vadd.f32 %v1686_v37, %v1617_v2  ;;  %v1298_v31 = vmul.f32 %v3436_v1, %v3571_v30  ;;  %v1299_v63 = vmul.f32 %v3436_v1, %v3579_v8  ;;  %v3689_v11 = vld [vmem:[#allocation2 + $0x208] sm:$0xff]  ;;  %v3691_v37 = vld [vmem:[#allocation2 + $0x210] sm:$0xff] }
 0x237   : > { %v1399_v34 = vmul.f32 %v3444_v13, %v3581_v7  ;;  %v2488_v48 = vpack.c.bf16 %v1899_v53, %v1898_v35  ;;  %v1229_v52 = vadd.f32 %v1197_v22, %v1128_v17  ;;  %v1230_v10 = vadd.f32 %v1198_v62, %v1129_v15 }
 0x238   : > { %v1818_v18 = vadd.f32 %v1786_v47, %v1717_v32  ;;  %v1819_v58 = vadd.f32 %v1787_v51, %v1718_v33  ;;  %v1400_v42 = vmul.f32 %v3444_v13, %v3592_v36  ;;  %v1500_v57 = vmul.f32 %v3455_v56, %v3594_v5 }
 0x239   : > { %v1501_v44 = vmul.f32 %v3455_v56, %v3600_v26  ;;  %2490 = vmatprep.subr.msk.bf16.mxu1 %vm3338_vm5, %v2488_v48  ;;  %v1330_v45 = vadd.f32 %v1298_v31, %v1229_v52  ;;  %v1331_v21 = vadd.f32 %v1299_v63, %v1230_v10  ;;  %v1602_v51 = vmul.f32 %v3471_v60, %v3685_v23 }
 0x23a   : > { %v1850_v47 = vmax.f32 %v1818_v18, 0.0  ;;  %v1851_v9 = vmax.f32 %v1819_v58, 0.0  ;;  %v1603_v28 = vmul.f32 %v3471_v60, %v3687_v50  ;;  %v1703_v59 = vmul.f32 %v3479_v14, %v3689_v11 }
 0x23b   : > { %v1704_v41 = vmul.f32 %v3479_v14, %v3691_v37  ;;  %v1431_v35 = vadd.f32 %v1399_v34, %v1330_v45  ;;  %v1432_v2 = vadd.f32 %v1400_v42, %v1331_v21  ;;  %v1804_v22 = vmul.f32 %v3487_v54, %v3699_v46 }
 0x23c   : > { %v1882_v4 = vmin.f32 %v1850_v47, 6.0  ;;  %v1883_v62 = vmin.f32 %v1851_v9, 6.0  ;;  %v1805_v53 = vmul.f32 %v3487_v54, %v3705_v40  ;;  %v979_v32 = vmul.f32 %v3400_v24, %v3958_v19  ;;  %v3743_v47 = vld [vmem:[#allocation2 + $0x108] sm:$0xff]  ;;  %v3749_v9 = vld [vmem:[#allocation2 + $0x110] sm:$0xff] }
 0x23d   : > { %v980_v17 = vmul.f32 %v3400_v24, %v3959_v20  ;;  %v1532_v15 = vadd.f32 %v1500_v57, %v1431_v35  ;;  %v1533_v33 = vadd.f32 %v1501_v44, %v1432_v2  ;;  %v1080_v31 = vmul.f32 %v3410_v55, %v3960_v27  ;;  %v3733_v27 = vld [vmem:[#allocation2 + $0x107] sm:$0xff]  ;;  %v3741_v44 = vld [vmem:[#allocation2 + $0x10f] sm:$0xff] }
 0x23e   : > { %v1081_v63 = vmul.f32 %v3410_v55, %v3961_v16  ;;  %v2491_v34 = vpack.c.bf16 %v1883_v62, %v1882_v4  ;;  %v1011_v48 = vadd.f32 %v3423_v49, %v979_v32  ;;  %v1181_v52 = vmul.f32 %v3427_v12, %v3962_v29 }
 0x23f   : > { %v1012_v18 = vadd.f32 %v3423_v49, %v980_v17  ;;  %v1634_v19 = vadd.f32 %v1602_v51, %v1532_v15  ;;  %v1635_v10 = vadd.f32 %v1603_v28, %v1533_v33  ;;  %v1182_v20 = vmul.f32 %v3427_v12, %v3963_v39  ;;  %v3751_v28 = vld [vmem:[#allocation2 + $0x109] sm:$0xff] }
 0x240   : > { %v1282_v58 = vmul.f32 %v3436_v1, %v3628_v0  ;;  %2493 = vmatpush3.bf16.xpose.msk.msra.mxu1 %vm3338_vm5, %v2491_v34  ;;  %v1112_v16 = vadd.f32 %v1080_v31, %v1011_v48  ;;  %v1283_v57 = vmul.f32 %v3436_v1, %v3630_v43  ;;  %v1383_v29 = vmul.f32 %v3444_v13, %v3634_v25 }
 0x241   : > { %v1113_v42 = vadd.f32 %v1081_v63, %v1012_v18  ;;  %v1735_v39 = vadd.f32 %v1703_v59, %v1634_v19  ;;  %v1736_v45 = vadd.f32 %v1704_v41, %v1635_v10  ;;  %v1384_v21 = vmul.f32 %v3444_v13, %v3636_v3  ;;  %v3757_v59 = vld [vmem:[#allocation2 + $0x111] sm:$0xff] }
 0x242   : > { %v1484_v51 = vmul.f32 %v3455_v56, %v3642_v61  ;;  %v1213_v4 = vadd.f32 %v1181_v52, %v1112_v16  ;;  %v1485_v2 = vmul.f32 %v3455_v56, %v3644_v6  ;;  %v1586_v62 = vmul.f32 %v3471_v60, %v3733_v27 }
 0x243   : > { %v1214_v35 = vadd.f32 %v1182_v20, %v1113_v42  ;;  %v1836_v41 = vadd.f32 %v1804_v22, %v1735_v39  ;;  %v1837_v32 = vadd.f32 %v1805_v53, %v1736_v45  ;;  %v1587_v17 = vmul.f32 %v3471_v60, %v3741_v44 }
 0x244   : > { %v1687_v15 = vmul.f32 %v3479_v14, %v3743_v47  ;;  %v1314_v33 = vadd.f32 %v1282_v58, %v1213_v4  ;;  %v1688_v63 = vmul.f32 %v3479_v14, %v3749_v9  ;;  %v1788_v34 = vmul.f32 %v3487_v54, %v3751_v28 }
 0x245   : > { %v1315_v31 = vadd.f32 %v1283_v57, %v1214_v35  ;;  %v1868_v48 = vmax.f32 %v1836_v41, 0.0  ;;  %v1869_v18 = vmax.f32 %v1837_v32, 0.0  ;;  %v1789_v22 = vmul.f32 %v3487_v54, %v3757_v59 }
 0x246   : > { %v997_v53 = vmul.f32 %v3400_v24, %v3571_v30  ;;  %v1415_v52 = vadd.f32 %v1383_v29, %v1314_v33  ;;  %v998_v10 = vmul.f32 %v3400_v24, %v3579_v8  ;;  %v1098_v20 = vmul.f32 %v3410_v55, %v3581_v7  ;;  %v1668_v33 = vld [vmem:[#allocation2 + $0x228] sm:$0xff] }
 0x247   : > { %v1416_v19 = vadd.f32 %v1384_v21, %v1315_v31  ;;  %v1900_v58 = vmin.f32 %v1868_v48, 6.0  ;;  %v1901_v16 = vmin.f32 %v1869_v18, 6.0  ;;  %v1099_v57 = vmul.f32 %v3410_v55, %v3592_v36 }
 0x248   : > { %v1029_v42 = vadd.f32 %v3423_v49, %v997_v53  ;;  %v1516_v39 = vadd.f32 %v1484_v51, %v1415_v52  ;;  %v1030_v4 = vadd.f32 %v3423_v49, %v998_v10  ;;  %v1199_v30 = vmul.f32 %v3427_v12, %v3594_v5  ;;  %v1567_v51 = vld [vmem:[#allocation2 + $0x227] sm:$0xff]  ;;  %v1770_v52 = vld [vmem:[#allocation2 + $0x231] sm:$0xff] }
 0x249   : > { %v1517_v45 = vadd.f32 %v1485_v2, %v1416_v19  ;;  %v2494_v29 = vpack.c.bf16 %v1901_v16, %v1900_v58  ;;  %v1200_v8 = vmul.f32 %v3427_v12, %v3600_v26  ;;  %v1300_v7 = vmul.f32 %v3436_v1, %v3685_v23  ;;  %v1568_v2 = vld [vmem:[#allocation2 + $0x22f] sm:$0xff] }
 0x24a   : > { %v1130_v21 = vadd.f32 %v1098_v20, %v1029_v42  ;;  %v1618_v35 = vadd.f32 %v1586_v62, %v1516_v39  ;;  %v1131_v32 = vadd.f32 %v1099_v57, %v1030_v4  ;;  %v1301_v36 = vmul.f32 %v3436_v1, %v3687_v50  ;;  %v1669_v62 = vld [vmem:[#allocation2 + $0x230] sm:$0xff] }
 0x24b   : > { %v1619_v41 = vadd.f32 %v1587_v17, %v1517_v45  ;;  %2496 = vmatprep.subr.msk.bf16.mxu1 %vm3338_vm5, %v2494_v29  ;;  %v1401_v31 = vmul.f32 %v3444_v13, %v3689_v11  ;;  %v1402_v26 = vmul.f32 %v3444_v13, %v3691_v37  ;;  %v1502_v23 = vmul.f32 %v3455_v56, %v3699_v46  ;;  %v1769_v53 = vld [vmem:[#allocation2 + $0x229] sm:$0xff] }
 0x24c   : > { %v1231_v5 = vadd.f32 %v1199_v30, %v1130_v21  ;;  %v1719_v17 = vadd.f32 %v1687_v15, %v1618_v35  ;;  %v1232_v50 = vadd.f32 %v1200_v8, %v1131_v32  ;;  %v1503_v18 = vmul.f32 %v3455_v56, %v3705_v40 }
 0x24d   : > { %v1720_v48 = vadd.f32 %v1688_v63, %v1619_v41  ;;  %v1604_v10 = vmul.f32 %v3471_v60, %v1567_v51  ;;  %v1605_v11 = vmul.f32 %v3471_v60, %v1568_v2  ;;  %v1705_v20 = vmul.f32 %v3479_v14, %v1668_v33 }
 0x24e   : > { %v1332_v19 = vadd.f32 %v1300_v7, %v1231_v5  ;;  %v1820_v37 = vadd.f32 %v1788_v34, %v1719_v17  ;;  %v1333_v16 = vadd.f32 %v1301_v36, %v1232_v50  ;;  %v1706_v46 = vmul.f32 %v3479_v14, %v1669_v62 }
 0x24f   : > { %v1821_v58 = vadd.f32 %v1789_v22, %v1720_v48  ;;  %v1806_v63 = vmul.f32 %v3487_v54, %v1769_v53  ;;  %v1807_v42 = vmul.f32 %v3487_v54, %v1770_v52  ;;  %v981_v40 = vmul.f32 %v3400_v24, %v3628_v0  ;;  %v1652_v53 = vld [vmem:[#allocation2 + $0x128] sm:$0xff] }
 0x250   : > { %v1433_v15 = vadd.f32 %v1401_v31, %v1332_v19  ;;  %v1852_v57 = vmax.f32 %v1820_v37, 0.0  ;;  %v1434_v45 = vadd.f32 %v1402_v26, %v1333_v16  ;;  %v982_v4 = vmul.f32 %v3400_v24, %v3630_v43 }
 0x251   : > { %v1853_v39 = vmax.f32 %v1821_v58, 0.0  ;;  %v1013_v34 = vadd.f32 %v3423_v49, %v981_v40  ;;  %v1082_v22 = vmul.f32 %v3410_v55, %v3634_v25  ;;  %v1083_v29 = vmul.f32 %v3410_v55, %v3636_v3 }
 0x252   : > { %v1534_v30 = vadd.f32 %v1502_v23, %v1433_v15  ;;  %v1884_v21 = vmin.f32 %v1852_v57, 6.0  ;;  %v1535_v7 = vadd.f32 %v1503_v18, %v1434_v45  ;;  %v1014_v0 = vadd.f32 %v3423_v49, %v982_v4 }
 0x253   : > { %v1885_v8 = vmin.f32 %v1853_v39, 6.0  ;;  %v1114_v41 = vadd.f32 %v1082_v22, %v1013_v34  ;;  %v1183_v32 = vmul.f32 %v3427_v12, %v3642_v61  ;;  %v1184_v24 = vmul.f32 %v3427_v12, %v3644_v6  ;;  %v1551_v61 = vld [vmem:[#allocation2 + $0x127] sm:$0xff]  ;;  %v1552_v6 = vld [vmem:[#allocation2 + $0x12f] sm:$0xff] }
 0x254   : > { %v1636_v35 = vadd.f32 %v1604_v10, %v1534_v30  ;;  %v1637_v36 = vadd.f32 %v1605_v11, %v1535_v7  ;;  %v1115_v51 = vadd.f32 %v1083_v29, %v1014_v0  ;;  %v1284_v25 = vmul.f32 %v3436_v1, %v3733_v27  ;;  %v1653_v10 = vld [vmem:[#allocation2 + $0x130] sm:$0xff]  ;;  %v1904_v34 = vld [vmem:[#allocation3] sm:$0xff] }
 0x255   : > { %v2497_v43 = vpack.c.bf16 %v1885_v8, %v1884_v21  ;;  %v1215_v3 = vadd.f32 %v1183_v32, %v1114_v41  ;;  %v1285_v2 = vmul.f32 %v3436_v1, %v3741_v44  ;;  %v1385_v12 = vmul.f32 %v3444_v13, %v3743_v47 }
 0x256   : > { %v1737_v55 = vadd.f32 %v1705_v20, %v1636_v35  ;;  %v1738_v49 = vadd.f32 %v1706_v46, %v1637_v36  ;;  %v1216_v33 = vadd.f32 %v1184_v24, %v1115_v51  ;;  %v1386_v27 = vmul.f32 %v3444_v13, %v3749_v9  ;;  %v1753_v9 = vld [vmem:[#allocation2 + $0x129] sm:$0xff] }
 0x257   : > { %2499 = vmatpush3.bf16.xpose.msk.msra.mxu1 %vm3338_vm5, %v2497_v43  ;;  %v1316_v31 = vadd.f32 %v1284_v25, %v1215_v3  ;;  %v1486_v1 = vmul.f32 %v3455_v56, %v3751_v28  ;;  %v1588_v44 = vmul.f32 %v3471_v60, %v1551_v61  ;;  %v1487_v18 = vmul.f32 %v3455_v56, %v3757_v59  ;;  %v1754_v28 = vld [vmem:[#allocation2 + $0x131] sm:$0xff] }
 0x258   : > { %v1838_v5 = vadd.f32 %v1806_v63, %v1737_v55  ;;  %v1839_v26 = vadd.f32 %v1807_v42, %v1738_v49  ;;  %v1317_v23 = vadd.f32 %v1285_v2, %v1216_v33  ;;  %v1589_v47 = vmul.f32 %v3471_v60, %v1552_v6  ;;  %v3964_v25 = vld [vmem:[#allocation14_spill] sm:$0xff] (!%p2332_p1) }
 0x259   : > { %v1417_v17 = vadd.f32 %v1385_v12, %v1316_v31  ;;  %v1689_v37 = vmul.f32 %v3479_v14, %v1652_v53  ;;  %v1690_v46 = vmul.f32 %v3479_v14, %v1653_v10  ;;  %v1790_v56 = vmul.f32 %v3487_v54, %v1753_v9  ;;  %v2593_v14 = vld [vmem:[%s2841_s16] sm:$0xf] }
 0x25a   : > { %v1870_v62 = vmax.f32 %v1838_v5, 0.0  ;;  %v1871_v48 = vmax.f32 %v1839_v26, 0.0  ;;  %v1418_v50 = vadd.f32 %v1386_v27, %v1317_v23  ;;  %v1791_v59 = vmul.f32 %v3487_v54, %v1754_v28  ;;  %v2087_v54 = vld [vmem:[%s3911_s6] sm:$0xf] (!%p2332_p1) }
 0x25b   : > { %v1518_v19 = vadd.f32 %v1486_v1, %v1417_v17  ;;  %v2692_v8 = vmov (!%p2332_p1), 0   ;;  %v2093_v7 = vunpack.c.l.s4 (!%p2332_p1), %v2693_v38  ;;  %v2095_v0 = vlaneseq (!%p2332_p1) }
 0x25c   : > { %v1902_v52 = vmin.f32 %v1870_v62, 6.0  ;;  %v1903_v11 = vmin.f32 %v1871_v48, 6.0  ;;  %v1519_v13 = vadd.f32 %v1487_v18, %v1418_v50  ;;  %2594 = vset.pattern.permute.xlu0 (!%p2332_p1), %v2692_v8 }
 0x25d   : > { %v1620_v20 = vadd.f32 %v1588_v44, %v1518_v19  ;;  %2090 = vperm.xlu0 (!%p2332_p1), %2594, %v2087_v54   ;;  %v2094_v35 = vunpack.c.0.s8 (!%p2332_p1), %v2093_v7  ;;  %v2096_v41 = vshrl.u32 (!%p2332_p1), %v2095_v0, 7 }
 0x25e   : > { %v2500_v58 = vpack.c.bf16 %v1903_v11, %v1902_v52  ;;  %v1621_v16 = vadd.f32 %v1589_v47, %v1519_v13 }
 0x25f   : > { %v1721_v15 = vadd.f32 %v1689_v37, %v1620_v20  ;;  %v2097_v32 = vsub.s32 (!%p2332_p1), %v2094_v35, %v2096_v41 }
 0x260   : > { %2502 = vmatprep.subr.msk.bf16.mxu1 %vm3338_vm5, %v2500_v58  ;;  %v1722_v60 = vadd.f32 %v1690_v46, %v1621_v16 }
 0x261   : > { %v1822_v63 = vadd.f32 %v1790_v56, %v1721_v15 }
 0x262   : > { %v1823_v42 = vadd.f32 %v1791_v59, %v1722_v60 }
 0x263   : > { %v1854_v40 = vmax.f32 %v1822_v63, 0.0 }
 0x264   : > { %v1855_v57 = vmax.f32 %v1823_v42, 0.0 }
 0x265   : > { %v1886_v39 = vmin.f32 %v1854_v40, 6.0 }
 0x266   : > { %v1887_v45 = vmin.f32 %v1855_v57, 6.0 }
 0x268   : > { %v2503_v4 = vpack.c.bf16 %v1887_v45, %v1886_v39 }
 0x26a   : > { %2505 = vmatpush3.bf16.xpose.msk.msra.mxu1 %vm3338_vm5, %v2503_v4 }
 0x271   : > { %2407 = vmatmul.mubr.msk.f32.vlgmr.msra.gmra.mrb[0].mxu1 %vm890_vm4, %v2593_v14 }
 0x2dc   : > { %v2091_v24 = vpop.permute.xlu0 (!%p2332_p1), %2090 }
 0x2dd   : > { %v2098_v36 = vrot.slane (!%p2332_p1), %v2091_v24, %v2097_v32 }
 0x344   : > { %v2071_v30 = vpop.f32.mrb[0].mxu1  ;;  %2085 = sbr.rel (%p2332_p1) target bundleno = 855 (0x357), region = 56 }
 0x345   : > { %v2073_v22 = vpop.f32.mrb[1].mxu1 }
 0x346   : > { %v2078_v29 = vcombine.low %v2071_v30, %v2073_v22 }
 0x348   : > { %v2080_v21 = vadd.f32 %v2078_v29, %v1904_v34 }
 0x34a   : > { %2081 = vst [vmem:[#allocation3] sm:$0xff] %v2080_v21 }
 0x351   : > { %v2086_v43 = vld [vmem:[#allocation3] sm:$0xff] }
 0x352   : > { %v2100_v51 = vadd.f32 %v2098_v36, %v2086_v43 }
 0x354   : > { %v2101_v55 = vadd.f32 %v2100_v51, %v3964_v25 }
 0x356   : > { %2102 = vst [vmem:[%s346_s1] sm:$0xff] %v2101_v55 }
 0x357 PF: > { %s2340_s27 = sshll.u32 %s2677_s28, 7  ;;  %s2118_s14 = sshll.u32 %s346_s1, 4  ;;  %s2119_s14 = int_to_ptr.vmem [resolvable:$true] %s2118_s14 }
 0x358   : > { %s3854_s11 = scalar_lea.hbm %s3912_s7, %s2340_s27  ;;  %s3965_s17 = sand.u32 1, %s2665_s25  }
 0x359   : > { %s2104_s18 = scalar_lea.sflag [#allocation5], %s3965_s17  ;;  %s2595_s21 = scalar_lea.vmem %s2119_s14, 128 }
 0x35a   : > { %p2596_p2 = scmp.ne.s32.totalorder %s2119_s14, %s2595_s21  ;;  %s2694_s10 = smov [#allocation4]  }
 0x35b   : > { %s2599_s15 = sshll.u32 %s2694_s10, 4  ;;  %s2600_s15 = int_to_ptr.vmem [resolvable:$false] %s2599_s15 }
 0x35c   : > { %p2597_p4 = pnand %p2596_p2, %p2784_p3  ;;  %s2601_s20 = scalar_lea.vmem %s2600_s15, 256 }
 0x35d   : > { %p2602_p6 = scmp.lt.s32.totalorder %s2119_s14, %s2600_s15  ;;  %p2603_p7 = scmp.lt.s32.totalorder %s2601_s20, %s2595_s21 }
 0x35e   : > { %p2598_p5 = pneg %p2597_p4 }
 0x35f   : > { %p2604_p8 = por %p2603_p7, %p2602_p6 }
 0x361   : > { %p2605_p10 = pnand %p2604_p8, %p2598_p5 }
 0x363   : > { %2608 = shalt.err (!%p2605_p10)
}
 0x364   : > { %s2609_s1 = scalar_lea.hbm %s3854_s11, 128  ;;  %s2613_s23 = scalar_lea.hbm %s3912_s7, 256 }
 0x365   : > { %p2610_p11 = scmp.ne.s32.totalorder %s3854_s11, %s2609_s1  ;;  %p2614_p0 = scmp.lt.u32.totalorder %s3854_s11, %s3912_s7 }
 0x366   : > { %p2615_p1 = scmp.lt.u32.totalorder %s2613_s23, %s2609_s1  ;;  %p2617_p4 = scmp.lt.u32.totalorder %s2609_s1, %s3854_s11 }
 0x367   : > { %p2611_p12 = pnand %p2610_p11, %p2784_p3 }
 0x368   : > { %p2616_p2 = por %p2615_p1, %p2614_p0 }
 0x369   : > { %p2612_p13 = pneg %p2611_p12 }
 0x36a   : > { %p2618_p5 = por %p2617_p4, %p2616_p2 }
 0x36c   : > { %p2619_p6 = pnand %p2618_p5, %p2612_p13 }
 0x36e   : > { %2622 = shalt.err (!%p2619_p6)
}
 0x36f   : > { %2506 = dma.vmem_to_hbm [thread:$0]  (%p2784_p3), %s2119_s14, 128, %s3854_s11, %s2104_s18  }
 0x370 PF: > { %p2512_p7 = scmp.ge.s32.totalorder %s2689_s8, 2  ;;  %s2130_s16 = sand.u32 1, %s2661_s24  }
 0x371   : > { %s2131_s0 = scalar_lea.sflag [#allocation5], %s2130_s16 }
 0x372   : > { %p2509_p8 = pnand %p2512_p7, %p2794_p9 }
 0x374   : > { %2656 = dma.done.wait (!%p2509_p8), %s2131_s0, 128  }
 0x375   : > { %2658 = vsyncadd (!%p2509_p8), %s2131_s0, 4294967168  ;;  %s20_s8 = sadd.s32 1, %s2689_s8   ;;  %s3967_s26 = sld [smem:[#allocation7_spill]] }
 0x376   : > { %p17_p10 = scmp.ge.s32.totalorder %s20_s8, 6   ;;  %s3968_s27 = sld [smem:[#allocation13_spill]] }
 0x377   : > { %s3969_s13 = sld [smem:[#allocation8_spill]]  ;;  %s3970_s28 = sld [smem:[#allocation9_spill]] }
 0x378   : > { %s3971_s29 = sld [smem:[#allocation10_spill]]  ;;  %s3972_s30 = sld [smem:[#allocation11_spill]] }
 0x379   : > { %s3973_s24 = smov %s2665_s25  ;;  %19 = sbr.rel (!%p17_p10) target bundleno = 8 (0x8), region = 109 }
 0x37b   : > { %s3974_s25 = smov %s3967_s26 }
 0x37c   : > { %s3975_s26 = smov %s3968_s27 }
 0x37d   : > { %s3976_s27 = smov %s3969_s13 }
 0x380   :  { %2136 = vsyncpa [#allocation5], 1 }
 0x381   :  { %2138 = vsyncpa [#allocation5 + $0x1], 1 }

</bundles_post_ra>
